<compile_context>
chip_gen: v7x
topology: tpu7x:2x2x1
jax: 0.10.0
libtpu: 0.0.40
codegen_flags: <defaults>
</compile_context>

<pallas_src>
import functools
import math

import jax
import jax.numpy as jnp
import numpy as np
from jax.experimental import pallas as pl
from jax.experimental.pallas import tpu as pltpu


def get_power(task_info, nmodes):
    # pkufiber convention: task_info[:, 0] is launch power in dBm,
    # per-mode linear power P = 10^(P_dBm/10) / Nmodes.
    # TODO(synk): exact get_power scaling (mW vs W) assumed as 10^(dBm/10)/Nmodes.
    return 10.0 ** (task_info[:, 0] / 10.0) / nmodes


def _roll_rows(plane, shift, rows, nmodes):
    """jnp.roll(plane, shift, axis=0) on a [rows, W] in-kernel tile."""
    s = shift % rows
    if s == 0 or nmodes == 1:
        return plane
    if nmodes == 2:
        # rows/2 rotation is its own inverse -> direction-independent; keep it
        # on the XLU (the kernel is VALU-bound, XLU has slack).
        return pltpu.roll(plane, shift=s, axis=0)
    # Nmodes > 2: direction matters -> unambiguous sublane slice-concat.
    # TODO(synk): switch to pltpu.roll once its direction is verified == jnp.roll here.
    return jnp.concatenate([plane[rows - s:, :], plane[:rows - s, :]], axis=0)


def _sincos(theta):
    """Fused sin/cos of an f32 tile.

    TPU's EUP has no sin/cos, so jnp.sin and jnp.cos each lower to a full
    range reduction + polynomial on the VALU.  Computing both here shares the
    range reduction, r^2 and the quadrant selects (~2x cheaper); polynomial
    error is ~1e-7 on the reduced range.
    """
    two_over_pi = 0.6366197723675814
    k = jnp.floor(theta * two_over_pi + 0.5)       # nearest quadrant
    # Cody-Waite two-part pi/2 (hi part exactly representable in f32).
    r = theta - k * 1.5707963705062866
    r = r + k * 4.371139000186241e-08
    q = k.astype(jnp.int32) & 3
    r2 = r * r
    # Cephes minimax polynomials on [-pi/4, pi/4].
    sp = ((-1.9515295891e-4 * r2 + 8.3321608736e-3) * r2
          - 1.6666654611e-1) * (r2 * r) + r
    cp = ((2.443315711809948e-5 * r2 - 1.388731625493765e-3) * r2
          + 4.166664568298827e-2) * (r2 * r2) - 0.5 * r2 + 1.0
    swap = (q & 1) == 1
    s = jnp.where(swap, cp, sp)
    c = jnp.where(swap, sp, cp)
    s = jnp.where(q >= 2, -s, s)
    c = jnp.where((q == 1) | (q == 2), -c, c)
    return s, c


def _snse_kernel(kc_ref, wc_ref, x_ref, xh_ref, out_ref, *,
                 nmodes, b_pad, ntaps, tile_l):
    """One lane-dense output tile per grid step.

    kc_ref : VMEM f32[R, nmodes*ntaps]  per-row Nkernel coeffs, pre-scaled by P
                                        col d*ntaps+t = K[m(row), (m+d)%nmodes, t]*P[b(row)]
    wc_ref : VMEM f32[R, ntaps]         per-row conv1d taps, pre-scaled by P
    x_ref  : VMEM f32[2R, tile_l]       main window (rows: plane, mode, batch-chunk)
    xh_ref : VMEM f32[2R, 128]          lane halo (next 128 samples)
    out_ref: VMEM f32[2R, tile_l]       rows [0,R)=real, [R,2R)=imag
    """
    R = nmodes * b_pad
    h = ntaps // 2

    # Tile-aligned working window [2R, tile_l + 128].
    xw = jnp.concatenate([x_ref[...], xh_ref[...]], axis=1)
    xr = xw[0:R, :]          # real plane
    xi = xw[R:2 * R, :]      # imag plane

    # roll(x, 1, modes): one whole-plane sublane rotation by b_pad rows.
    rxr = _roll_rows(xr, b_pad, R, nmodes)
    rxi = _roll_rows(xi, b_pad, R, nmodes)

    pow2 = xr * xr + xi * xi
    zr = xr * rxr + xi * rxi
    zi = xi * rxr - xr * rxi

    kc = kc_ref[...]
    wc = wc_ref[...]

    # theta = P * phi; start from the (d=0, t=0) term (no add-to-zero).
    theta = kc[:, 0:1] * pow2[:, 0:tile_l]
    for d in range(nmodes):
        if d == 0:
            p2d = pow2
        else:
            # p2d[row(m,b)] = pow2[row((m+d)%nmodes, b)]
            p2d = _roll_rows(pow2, (R - d * b_pad) % R, R, nmodes)
        for t in range(ntaps):
            if d == 0 and t == 0:
                continue
            j = d * ntaps + t
            theta = theta + kc[:, j:j + 1] * p2d[:, t:t + tile_l]

    # c * P (shared-kernel "valid" conv1d over z; P folded into wc).
    cr = wc[:, 0:1] * zr[:, 0:tile_l]
    ci = wc[:, 0:1] * zi[:, 0:tile_l]
    for t in range(1, ntaps):
        wt = wc[:, t:t + 1]
        cr = cr + wt * zr[:, t:t + tile_l]
        ci = ci + wt * zi[:, t:t + tile_l]

    rxr_c = rxr[:, h:h + tile_l]
    rxi_c = rxi[:, h:h + tile_l]
    xcr = xr[:, h:h + tile_l]
    xci = xi[:, h:h + tile_l]

    # add * P = 1j * (c*P) * roll(x,1,modes)[crop]
    ar = -ci * rxr_c - cr * rxi_c
    ai = cr * rxr_c - ci * rxi_c

    # TODO(synk): on v6e/v7x the bulk elementwise path above could run in bf16
    # (2x VPU packing); kept in f32 here for accuracy on all generations.
    st, ct = _sincos(theta)

    out_ref[0:R, :] = xcr * ct - xci * st + ar
    out_ref[R:2 * R, :] = xcr * st + xci * ct + ai


def _plan_tiles(R, l_need, tile_l):
    """Pick the lane tile (multiple of 128) and a VMEM limit for the call."""
    try:
        cap = int(pltpu.get_tpu_info().vmem_capacity_bytes)   # 64 MiB/TC on v7x
    except Exception:
        cap = 64 << 20                                        # conservative fallback
    if cap < (32 << 20):
        cap = 64 << 20
    budget = (cap * 5) // 8        # headroom for compiler temporaries / spills
    # f32 bytes per lane column held per step: double-buffered in/out blocks
    # (2 * 2R each) plus ~20 [R, ~tile] intermediates (generous); fixed part
    # covers the 128-lane halo columns + coefficient blocks.
    per_lane = 4 * (8 * R + 8 * R + 20 * R)
    fixed = per_lane * 128 + (2 << 20)
    l_need128 = max(128, ((l_need + 127) // 128) * 128)
    if tile_l is None:
        t = max(128, (budget - fixed) // per_lane)
        tile_l = int(min(4096, (t // 128) * 128))
        tile_l = min(tile_l, l_need128)
        # Prefer >=2 lane tiles when the chunk is long enough (v7x has 2 TCs),
        # without dropping below the ~1024-lane throughput sweet spot.
        if tile_l >= l_need128 and l_need >= 2048:
            tile_l = (((l_need + 1) // 2 + 127) // 128) * 128
    else:
        assert tile_l % 128 == 0, "tile_l must be a multiple of 128"
        tile_l = min(tile_l, l_need128)
    est = per_lane * tile_l + fixed
    vmem_limit = int(min(cap - (4 << 20), max(est, 32 << 20)))
    return tile_l, vmem_limit


def snse_filter_pallas(x, task_info, nkernel, conv_w, ntaps, *,
                       tile_l=None, fold_min_chunk=1024):
    """x: complex64 [B, M, Nmodes] -> complex64 [B, M-ntaps+1, Nmodes]."""
    B, M, nmodes = x.shape
    assert ntaps % 2 == 1, "ntaps must be odd (as in the PyTorch module's usage)"
    assert ntaps - 1 <= 128, "halo block assumes ntaps-1 <= 128"
    h = ntaps // 2
    lout = M - ntaps + 1
    assert lout >= 1

    # Rows per plane must be a multiple of 8 (full vregs).  If B alone cannot
    # fill them, fold `rep` sample-chunks per batch into the spare rows (each
    # chunk carries its own ntaps-1 halo) so padded rows do useful work.
    b_mult = 8 // math.gcd(nmodes, 8)
    rep = 1
    if B % b_mult != 0:
        cand = b_mult // math.gcd(B, b_mult)
        if cand > 1 and (lout + cand - 1) // cand >= fold_min_chunk:
            rep = cand
    bv = B * rep
    b_pad = ((bv + b_mult - 1) // b_mult) * b_mult
    R = nmodes * b_pad

    l_chunk = (lout + rep - 1) // rep            # output samples per chunk
    tile_l, vmem_limit = _plan_tiles(R, l_chunk, tile_l)
    nt = (l_chunk + tile_l - 1) // tile_l        # lane tiles on the grid
    l_padded = nt * tile_l                       # padded output width
    m_in = l_padded + 128                        # input width incl. halo block
    win = l_chunk + ntaps - 1                    # valid input samples per chunk

    P = get_power(task_info, nmodes).astype(jnp.float32)             # [B]
    P_pad = jnp.zeros((b_pad,), jnp.float32).at[:bv].set(jnp.repeat(P, rep))

    # complex -> stacked real/imag planes; rows = (plane, mode, batch-chunk).
    xplanes = jnp.stack([jnp.real(x), jnp.imag(x)], axis=0).astype(jnp.float32)
    xp = jnp.transpose(xplanes, (0, 3, 1, 2))                         # [2,nmodes,B,M]
    need = (rep - 1) * l_chunk + win
    if need > M:
        xp = jnp.pad(xp, ((0, 0), (0, 0), (0, 0), (0, need - M)))
    chunks = [xp[..., r * l_chunk:r * l_chunk + win] for r in range(rep)]
    xp = jnp.stack(chunks, axis=3).reshape(2, nmodes, bv, win)
    xp = jnp.pad(xp, ((0, 0), (0, 0), (0, b_pad - bv), (0, m_in - win)))
    xin = xp.reshape(2 * R, m_in)
    # TODO(synk): if the filter is applied repeatedly, keep data in this
    # [2R, M] plane layout between calls to avoid the HBM (de)interleave passes.

    # Per-row, power-scaled coefficient tables (host-side XLA, tiny).
    nk = nkernel.astype(jnp.float32)
    m_idx = jnp.arange(nmodes)[:, None]
    d_idx = jnp.arange(nmodes)[None, :]
    q_idx = (m_idx + d_idx) % nmodes
    karr = nk[m_idx, q_idx, :]                                        # [m, d, t]
    kcols = (karr.reshape(nmodes, 1, nmodes * ntaps)
             * P_pad[None, :, None]).reshape(R, nmodes * ntaps)
    w_flat = conv_w.reshape(-1).astype(jnp.float32)
    wcols = jnp.broadcast_to(w_flat[None, None, :] * P_pad[None, :, None],
                             (nmodes, b_pad, ntaps)).reshape(R, ntaps)

    tl128 = tile_l // 128
    kernel = functools.partial(_snse_kernel, nmodes=nmodes, b_pad=b_pad,
                               ntaps=ntaps, tile_l=tile_l)

    out_packed = pl.pallas_call(
        kernel,
        out_shape=jax.ShapeDtypeStruct((2 * R, l_padded), jnp.float32),
        grid=(nt,),
        in_specs=[
            pl.BlockSpec((R, nmodes * ntaps), lambda j: (0, 0)),         # kcols
            pl.BlockSpec((R, ntaps), lambda j: (0, 0)),                  # wcols
            pl.BlockSpec((2 * R, tile_l), lambda j: (0, j)),             # main window
            pl.BlockSpec((2 * R, 128), lambda j: (0, (j + 1) * tl128)),  # lane halo
        ],
        out_specs=pl.BlockSpec((2 * R, tile_l), lambda j: (0, j)),
        compiler_params=pltpu.CompilerParams(
            dimension_semantics=("parallel",),
            vmem_limit_bytes=vmem_limit),
    )(kcols, wcols, xin, xin)

    out = out_packed.reshape(2, nmodes, b_pad, l_padded)[:, :, :bv, :]
    out = out.reshape(2, nmodes, B, rep, l_padded)[..., :l_chunk]
    out = out.reshape(2, nmodes, B, rep * l_chunk)[..., :lout]
    y = jax.lax.complex(out[0], out[1])                                # [nmodes,B,lout]
    return jnp.transpose(y, (1, 2, 0))                                 # [B,lout,nmodes]


def snse_filter_ref(x, task_info, nkernel, conv_w, ntaps):
    """Pure-JAX reference with the same semantics (for verification)."""
    B, M, nmodes = x.shape
    h = ntaps // 2
    lout = M - ntaps + 1
    P = get_power(task_info, nmodes)
    pow2 = jnp.abs(x) ** 2
    z = x * jnp.roll(jnp.conj(x), 1, axis=-1)
    phi = jnp.zeros((B, lout, nmodes), jnp.float32)
    c = jnp.zeros((B, lout, nmodes), x.dtype)
    w = conv_w.reshape(-1)
    for t in range(ntaps):
        phi = phi + jnp.einsum('bnq,pq->bnp', pow2[:, t:t + lout, :], nkernel[:, :, t])
        c = c + w[t] * z[:, t:t + lout, :]
    xroll = jnp.roll(x, 1, axis=-1)
    add = 1j * c * xroll[:, h:M - h, :]
    return (x[:, h:M - h, :] * jnp.exp(1j * phi * P[:, None, None])
            + add * P[:, None, None])


def _run_case(key, B, M, nmodes, ntaps, *, tile_l=None, fold_min_chunk=1024):
    k1, k2, k3, k4 = jax.random.split(key, 4)
    # Module zero-inits its parameters; small random values here so the
    # compute path is non-trivial (ParameterList selection by `i` is trivial
    # host-side indexing and is done before calling the kernel).
    nkernel = 0.05 * jax.random.normal(k1, (nmodes, nmodes, ntaps), jnp.float32)
    conv_w = 0.05 * jax.random.normal(k2, (ntaps,), jnp.float32)
    xr0 = jax.random.normal(k3, (B, M, nmodes), jnp.float32)
    xi0 = jax.random.normal(k4, (B, M, nmodes), jnp.float32)
    x = (xr0 + 1j * xi0).astype(jnp.complex64)
    # task_info columns: (P_dBm, Fi, Fs, Nch)
    pdbm = jnp.linspace(0.0, 2.0, B)
    task_info = jnp.stack([pdbm, jnp.zeros(B), jnp.full((B,), 80e9), jnp.ones(B)],
                          axis=1).astype(jnp.float32)

    out = jax.block_until_ready(
        snse_filter_pallas(x, task_info, nkernel, conv_w, ntaps,
                           tile_l=tile_l, fold_min_chunk=fold_min_chunk))
    ref = jax.block_until_ready(snse_filter_ref(x, task_info, nkernel, conv_w, ntaps))
    assert out.shape == (B, M - ntaps + 1, nmodes), out.shape
    np.testing.assert_allclose(np.asarray(out.real), np.asarray(ref.real),
                               rtol=2e-3, atol=2e-3)
    np.testing.assert_allclose(np.asarray(out.imag), np.asarray(ref.imag),
                               rtol=2e-3, atol=2e-3)


if __name__ == "__main__":
    base = jax.random.PRNGKey(0)
    k_a, k_b, k_c = jax.random.split(base, 3)

    # 1) Dual-pol case with batch->sample folding (rep=2, zero padded rows),
    #    auto lane tile + auto VMEM limit.
    _run_case(k_a, B=2, M=1024, nmodes=2, ntaps=7, tile_l=None, fold_min_chunk=256)

    # 2) Same shapes, folding disabled: exercises padded batch rows, an
    #    explicit multi-tile grid (4 lane tiles) and the inter-tile halo path.
    _run_case(k_b, B=2, M=1024, nmodes=2, ntaps=7, tile_l=256, fold_min_chunk=10**9)

    # 3) Nmodes=3: exercises the direction-safe slice-concat mode roll and a
    #    deeper sample fold (rep=8).
    _run_case(k_c, B=3, M=320, nmodes=3, ntaps=5, tile_l=None, fold_min_chunk=32)

    print("KERNEL_OK")
</pallas_src>

<mosaic_0001>
module attributes {stable_mosaic.version = 11 : i64} {
  func.func @_snse_kernel(%arg0: i32, %arg1: memref<8x14xf32, #tpu.memory_space<vmem>>, %arg2: memref<8x7xf32, #tpu.memory_space<vmem>>, %arg3: memref<16x512xf32, #tpu.memory_space<vmem>>, %arg4: memref<16x128xf32, #tpu.memory_space<vmem>>, %arg5: memref<16x512xf32, #tpu.memory_space<vmem>>) attributes {dimension_semantics = [#tpu.dimension_semantics<parallel>], iteration_bounds = array<i64: 1>, scalar_prefetch = 0 : i64, scratch_operands = 0 : i64, tpu.core_type = #tpu.core_type<tc>, window_params = [{pipeline_mode = #tpu.pipeline_mode<synchronous>, transform_indices = @transform_0, window_bounds = array<i64: 8, 14>}, {pipeline_mode = #tpu.pipeline_mode<synchronous>, transform_indices = @transform_1, window_bounds = array<i64: 8, 7>}, {transform_indices = @transform_2, window_bounds = array<i64: 16, 512>}, {transform_indices = @transform_3, window_bounds = array<i64: 16, 128>}, {transform_indices = @transform_4, window_bounds = array<i64: 16, 512>}]} {
    %c0 = arith.constant 0 : index
    %c0_0 = arith.constant 0 : index
    %0 = vector.load %arg3[%c0, %c0_0] : memref<16x512xf32, #tpu.memory_space<vmem>>, vector<16x512xf32>
    %c0_1 = arith.constant 0 : index
    %c0_2 = arith.constant 0 : index
    %1 = vector.load %arg4[%c0_1, %c0_2] : memref<16x128xf32, #tpu.memory_space<vmem>>, vector<16x128xf32>
    %2 = tpu.concatenate %0, %1 in 1 : vector<16x512xf32>, vector<16x128xf32> -> vector<16x640xf32>
    %3 = vector.extract_strided_slice %2 {offsets = [0, 0], sizes = [8, 640], strides = [1, 1]} : vector<16x640xf32> to vector<8x640xf32>
    %4 = vector.extract_strided_slice %2 {offsets = [8, 0], sizes = [8, 640], strides = [1, 1]} : vector<16x640xf32> to vector<8x640xf32>
    %c4_i32 = arith.constant 4 : i32
    %5 = tpu.dynamic_rotate %3 by %c4_i32 dim 0 : vector<8x640xf32>, i32 -> vector<8x640xf32>
    %c4_i32_3 = arith.constant 4 : i32
    %6 = tpu.dynamic_rotate %4 by %c4_i32_3 dim 0 : vector<8x640xf32>, i32 -> vector<8x640xf32>
    %7 = arith.mulf %3, %3 : vector<8x640xf32>
    %8 = arith.mulf %4, %4 : vector<8x640xf32>
    %9 = arith.addf %7, %8 : vector<8x640xf32>
    %10 = arith.mulf %3, %5 : vector<8x640xf32>
    %11 = arith.mulf %4, %6 : vector<8x640xf32>
    %12 = arith.addf %10, %11 : vector<8x640xf32>
    %13 = arith.mulf %4, %5 : vector<8x640xf32>
    %14 = arith.mulf %3, %6 : vector<8x640xf32>
    %15 = arith.subf %13, %14 : vector<8x640xf32>
    %c0_4 = arith.constant 0 : index
    %c0_5 = arith.constant 0 : index
    %16 = vector.load %arg1[%c0_4, %c0_5] : memref<8x14xf32, #tpu.memory_space<vmem>>, vector<8x14xf32>
    %c0_6 = arith.constant 0 : index
    %c0_7 = arith.constant 0 : index
    %17 = vector.load %arg2[%c0_6, %c0_7] : memref<8x7xf32, #tpu.memory_space<vmem>>, vector<8x7xf32>
    %18 = vector.extract_strided_slice %16 {offsets = [0, 0], sizes = [8, 1], strides = [1, 1]} : vector<8x14xf32> to vector<8x1xf32>
    %19 = vector.extract_strided_slice %9 {offsets = [0, 0], sizes = [8, 512], strides = [1, 1]} : vector<8x640xf32> to vector<8x512xf32>
    %20 = vector.broadcast %18 : vector<8x1xf32> to vector<8x512xf32>
    %21 = arith.mulf %20, %19 : vector<8x512xf32>
    %22 = vector.extract_strided_slice %16 {offsets = [0, 1], sizes = [8, 1], strides = [1, 1]} : vector<8x14xf32> to vector<8x1xf32>
    %23 = vector.extract_strided_slice %9 {offsets = [0, 1], sizes = [8, 512], strides = [1, 1]} : vector<8x640xf32> to vector<8x512xf32>
    %24 = vector.broadcast %22 : vector<8x1xf32> to vector<8x512xf32>
    %25 = arith.mulf %24, %23 : vector<8x512xf32>
    %26 = arith.addf %21, %25 : vector<8x512xf32>
    %27 = vector.extract_strided_slice %16 {offsets = [0, 2], sizes = [8, 1], strides = [1, 1]} : vector<8x14xf32> to vector<8x1xf32>
    %28 = vector.extract_strided_slice %9 {offsets = [0, 2], sizes = [8, 512], strides = [1, 1]} : vector<8x640xf32> to vector<8x512xf32>
    %29 = vector.broadcast %27 : vector<8x1xf32> to vector<8x512xf32>
    %30 = arith.mulf %29, %28 : vector<8x512xf32>
    %31 = arith.addf %26, %30 : vector<8x512xf32>
    %32 = vector.extract_strided_slice %16 {offsets = [0, 3], sizes = [8, 1], strides = [1, 1]} : vector<8x14xf32> to vector<8x1xf32>
    %33 = vector.extract_strided_slice %9 {offsets = [0, 3], sizes = [8, 512], strides = [1, 1]} : vector<8x640xf32> to vector<8x512xf32>
    %34 = vector.broadcast %32 : vector<8x1xf32> to vector<8x512xf32>
    %35 = arith.mulf %34, %33 : vector<8x512xf32>
    %36 = arith.addf %31, %35 : vector<8x512xf32>
    %37 = vector.extract_strided_slice %16 {offsets = [0, 4], sizes = [8, 1], strides = [1, 1]} : vector<8x14xf32> to vector<8x1xf32>
    %38 = vector.extract_strided_slice %9 {offsets = [0, 4], sizes = [8, 512], strides = [1, 1]} : vector<8x640xf32> to vector<8x512xf32>
    %39 = vector.broadcast %37 : vector<8x1xf32> to vector<8x512xf32>
    %40 = arith.mulf %39, %38 : vector<8x512xf32>
    %41 = arith.addf %36, %40 : vector<8x512xf32>
    %42 = vector.extract_strided_slice %16 {offsets = [0, 5], sizes = [8, 1], strides = [1, 1]} : vector<8x14xf32> to vector<8x1xf32>
    %43 = vector.extract_strided_slice %9 {offsets = [0, 5], sizes = [8, 512], strides = [1, 1]} : vector<8x640xf32> to vector<8x512xf32>
    %44 = vector.broadcast %42 : vector<8x1xf32> to vector<8x512xf32>
    %45 = arith.mulf %44, %43 : vector<8x512xf32>
    %46 = arith.addf %41, %45 : vector<8x512xf32>
    %47 = vector.extract_strided_slice %16 {offsets = [0, 6], sizes = [8, 1], strides = [1, 1]} : vector<8x14xf32> to vector<8x1xf32>
    %48 = vector.extract_strided_slice %9 {offsets = [0, 6], sizes = [8, 512], strides = [1, 1]} : vector<8x640xf32> to vector<8x512xf32>
    %49 = vector.broadcast %47 : vector<8x1xf32> to vector<8x512xf32>
    %50 = arith.mulf %49, %48 : vector<8x512xf32>
    %51 = arith.addf %46, %50 : vector<8x512xf32>
    %c4_i32_8 = arith.constant 4 : i32
    %52 = tpu.dynamic_rotate %9 by %c4_i32_8 dim 0 : vector<8x640xf32>, i32 -> vector<8x640xf32>
    %53 = vector.extract_strided_slice %16 {offsets = [0, 7], sizes = [8, 1], strides = [1, 1]} : vector<8x14xf32> to vector<8x1xf32>
    %54 = vector.extract_strided_slice %52 {offsets = [0, 0], sizes = [8, 512], strides = [1, 1]} : vector<8x640xf32> to vector<8x512xf32>
    %55 = vector.broadcast %53 : vector<8x1xf32> to vector<8x512xf32>
    %56 = arith.mulf %55, %54 : vector<8x512xf32>
    %57 = arith.addf %51, %56 : vector<8x512xf32>
    %58 = vector.extract_strided_slice %16 {offsets = [0, 8], sizes = [8, 1], strides = [1, 1]} : vector<8x14xf32> to vector<8x1xf32>
    %59 = vector.extract_strided_slice %52 {offsets = [0, 1], sizes = [8, 512], strides = [1, 1]} : vector<8x640xf32> to vector<8x512xf32>
    %60 = vector.broadcast %58 : vector<8x1xf32> to vector<8x512xf32>
    %61 = arith.mulf %60, %59 : vector<8x512xf32>
    %62 = arith.addf %57, %61 : vector<8x512xf32>
    %63 = vector.extract_strided_slice %16 {offsets = [0, 9], sizes = [8, 1], strides = [1, 1]} : vector<8x14xf32> to vector<8x1xf32>
    %64 = vector.extract_strided_slice %52 {offsets = [0, 2], sizes = [8, 512], strides = [1, 1]} : vector<8x640xf32> to vector<8x512xf32>
    %65 = vector.broadcast %63 : vector<8x1xf32> to vector<8x512xf32>
    %66 = arith.mulf %65, %64 : vector<8x512xf32>
    %67 = arith.addf %62, %66 : vector<8x512xf32>
    %68 = vector.extract_strided_slice %16 {offsets = [0, 10], sizes = [8, 1], strides = [1, 1]} : vector<8x14xf32> to vector<8x1xf32>
    %69 = vector.extract_strided_slice %52 {offsets = [0, 3], sizes = [8, 512], strides = [1, 1]} : vector<8x640xf32> to vector<8x512xf32>
    %70 = vector.broadcast %68 : vector<8x1xf32> to vector<8x512xf32>
    %71 = arith.mulf %70, %69 : vector<8x512xf32>
    %72 = arith.addf %67, %71 : vector<8x512xf32>
    %73 = vector.extract_strided_slice %16 {offsets = [0, 11], sizes = [8, 1], strides = [1, 1]} : vector<8x14xf32> to vector<8x1xf32>
    %74 = vector.extract_strided_slice %52 {offsets = [0, 4], sizes = [8, 512], strides = [1, 1]} : vector<8x640xf32> to vector<8x512xf32>
    %75 = vector.broadcast %73 : vector<8x1xf32> to vector<8x512xf32>
    %76 = arith.mulf %75, %74 : vector<8x512xf32>
    %77 = arith.addf %72, %76 : vector<8x512xf32>
    %78 = vector.extract_strided_slice %16 {offsets = [0, 12], sizes = [8, 1], strides = [1, 1]} : vector<8x14xf32> to vector<8x1xf32>
    %79 = vector.extract_strided_slice %52 {offsets = [0, 5], sizes = [8, 512], strides = [1, 1]} : vector<8x640xf32> to vector<8x512xf32>
    %80 = vector.broadcast %78 : vector<8x1xf32> to vector<8x512xf32>
    %81 = arith.mulf %80, %79 : vector<8x512xf32>
    %82 = arith.addf %77, %81 : vector<8x512xf32>
    %83 = vector.extract_strided_slice %16 {offsets = [0, 13], sizes = [8, 1], strides = [1, 1]} : vector<8x14xf32> to vector<8x1xf32>
    %84 = vector.extract_strided_slice %52 {offsets = [0, 6], sizes = [8, 512], strides = [1, 1]} : vector<8x640xf32> to vector<8x512xf32>
    %85 = vector.broadcast %83 : vector<8x1xf32> to vector<8x512xf32>
    %86 = arith.mulf %85, %84 : vector<8x512xf32>
    %87 = arith.addf %82, %86 : vector<8x512xf32>
    %88 = vector.extract_strided_slice %17 {offsets = [0, 0], sizes = [8, 1], strides = [1, 1]} : vector<8x7xf32> to vector<8x1xf32>
    %89 = vector.extract_strided_slice %12 {offsets = [0, 0], sizes = [8, 512], strides = [1, 1]} : vector<8x640xf32> to vector<8x512xf32>
    %90 = vector.broadcast %88 : vector<8x1xf32> to vector<8x512xf32>
    %91 = arith.mulf %90, %89 : vector<8x512xf32>
    %92 = vector.extract_strided_slice %17 {offsets = [0, 0], sizes = [8, 1], strides = [1, 1]} : vector<8x7xf32> to vector<8x1xf32>
    %93 = vector.extract_strided_slice %15 {offsets = [0, 0], sizes = [8, 512], strides = [1, 1]} : vector<8x640xf32> to vector<8x512xf32>
    %94 = vector.broadcast %92 : vector<8x1xf32> to vector<8x512xf32>
    %95 = arith.mulf %94, %93 : vector<8x512xf32>
    %96 = vector.extract_strided_slice %17 {offsets = [0, 1], sizes = [8, 1], strides = [1, 1]} : vector<8x7xf32> to vector<8x1xf32>
    %97 = vector.extract_strided_slice %12 {offsets = [0, 1], sizes = [8, 512], strides = [1, 1]} : vector<8x640xf32> to vector<8x512xf32>
    %98 = vector.broadcast %96 : vector<8x1xf32> to vector<8x512xf32>
    %99 = arith.mulf %98, %97 : vector<8x512xf32>
    %100 = arith.addf %91, %99 : vector<8x512xf32>
    %101 = vector.extract_strided_slice %15 {offsets = [0, 1], sizes = [8, 512], strides = [1, 1]} : vector<8x640xf32> to vector<8x512xf32>
    %102 = vector.broadcast %96 : vector<8x1xf32> to vector<8x512xf32>
    %103 = arith.mulf %102, %101 : vector<8x512xf32>
    %104 = arith.addf %95, %103 : vector<8x512xf32>
    %105 = vector.extract_strided_slice %17 {offsets = [0, 2], sizes = [8, 1], strides = [1, 1]} : vector<8x7xf32> to vector<8x1xf32>
    %106 = vector.extract_strided_slice %12 {offsets = [0, 2], sizes = [8, 512], strides = [1, 1]} : vector<8x640xf32> to vector<8x512xf32>
    %107 = vector.broadcast %105 : vector<8x1xf32> to vector<8x512xf32>
    %108 = arith.mulf %107, %106 : vector<8x512xf32>
    %109 = arith.addf %100, %108 : vector<8x512xf32>
    %110 = vector.extract_strided_slice %15 {offsets = [0, 2], sizes = [8, 512], strides = [1, 1]} : vector<8x640xf32> to vector<8x512xf32>
    %111 = vector.broadcast %105 : vector<8x1xf32> to vector<8x512xf32>
    %112 = arith.mulf %111, %110 : vector<8x512xf32>
    %113 = arith.addf %104, %112 : vector<8x512xf32>
    %114 = vector.extract_strided_slice %17 {offsets = [0, 3], sizes = [8, 1], strides = [1, 1]} : vector<8x7xf32> to vector<8x1xf32>
    %115 = vector.extract_strided_slice %12 {offsets = [0, 3], sizes = [8, 512], strides = [1, 1]} : vector<8x640xf32> to vector<8x512xf32>
    %116 = vector.broadcast %114 : vector<8x1xf32> to vector<8x512xf32>
    %117 = arith.mulf %116, %115 : vector<8x512xf32>
    %118 = arith.addf %109, %117 : vector<8x512xf32>
    %119 = vector.extract_strided_slice %15 {offsets = [0, 3], sizes = [8, 512], strides = [1, 1]} : vector<8x640xf32> to vector<8x512xf32>
    %120 = vector.broadcast %114 : vector<8x1xf32> to vector<8x512xf32>
    %121 = arith.mulf %120, %119 : vector<8x512xf32>
    %122 = arith.addf %113, %121 : vector<8x512xf32>
    %123 = vector.extract_strided_slice %17 {offsets = [0, 4], sizes = [8, 1], strides = [1, 1]} : vector<8x7xf32> to vector<8x1xf32>
    %124 = vector.extract_strided_slice %12 {offsets = [0, 4], sizes = [8, 512], strides = [1, 1]} : vector<8x640xf32> to vector<8x512xf32>
    %125 = vector.broadcast %123 : vector<8x1xf32> to vector<8x512xf32>
    %126 = arith.mulf %125, %124 : vector<8x512xf32>
    %127 = arith.addf %118, %126 : vector<8x512xf32>
    %128 = vector.extract_strided_slice %15 {offsets = [0, 4], sizes = [8, 512], strides = [1, 1]} : vector<8x640xf32> to vector<8x512xf32>
    %129 = vector.broadcast %123 : vector<8x1xf32> to vector<8x512xf32>
    %130 = arith.mulf %129, %128 : vector<8x512xf32>
    %131 = arith.addf %122, %130 : vector<8x512xf32>
    %132 = vector.extract_strided_slice %17 {offsets = [0, 5], sizes = [8, 1], strides = [1, 1]} : vector<8x7xf32> to vector<8x1xf32>
    %133 = vector.extract_strided_slice %12 {offsets = [0, 5], sizes = [8, 512], strides = [1, 1]} : vector<8x640xf32> to vector<8x512xf32>
    %134 = vector.broadcast %132 : vector<8x1xf32> to vector<8x512xf32>
    %135 = arith.mulf %134, %133 : vector<8x512xf32>
    %136 = arith.addf %127, %135 : vector<8x512xf32>
    %137 = vector.extract_strided_slice %15 {offsets = [0, 5], sizes = [8, 512], strides = [1, 1]} : vector<8x640xf32> to vector<8x512xf32>
    %138 = vector.broadcast %132 : vector<8x1xf32> to vector<8x512xf32>
    %139 = arith.mulf %138, %137 : vector<8x512xf32>
    %140 = arith.addf %131, %139 : vector<8x512xf32>
    %141 = vector.extract_strided_slice %17 {offsets = [0, 6], sizes = [8, 1], strides = [1, 1]} : vector<8x7xf32> to vector<8x1xf32>
    %142 = vector.extract_strided_slice %12 {offsets = [0, 6], sizes = [8, 512], strides = [1, 1]} : vector<8x640xf32> to vector<8x512xf32>
    %143 = vector.broadcast %141 : vector<8x1xf32> to vector<8x512xf32>
    %144 = arith.mulf %143, %142 : vector<8x512xf32>
    %145 = arith.addf %136, %144 : vector<8x512xf32>
    %146 = vector.extract_strided_slice %15 {offsets = [0, 6], sizes = [8, 512], strides = [1, 1]} : vector<8x640xf32> to vector<8x512xf32>
    %147 = vector.broadcast %141 : vector<8x1xf32> to vector<8x512xf32>
    %148 = arith.mulf %147, %146 : vector<8x512xf32>
    %149 = arith.addf %140, %148 : vector<8x512xf32>
    %150 = vector.extract_strided_slice %5 {offsets = [0, 3], sizes = [8, 512], strides = [1, 1]} : vector<8x640xf32> to vector<8x512xf32>
    %151 = vector.extract_strided_slice %6 {offsets = [0, 3], sizes = [8, 512], strides = [1, 1]} : vector<8x640xf32> to vector<8x512xf32>
    %152 = vector.extract_strided_slice %3 {offsets = [0, 3], sizes = [8, 512], strides = [1, 1]} : vector<8x640xf32> to vector<8x512xf32>
    %153 = vector.extract_strided_slice %4 {offsets = [0, 3], sizes = [8, 512], strides = [1, 1]} : vector<8x640xf32> to vector<8x512xf32>
    %cst = arith.constant 0.000000e+00 : f32
    %154 = vector.broadcast %cst : f32 to vector<8x512xf32>
    %155 = arith.subf %154, %149 : vector<8x512xf32>
    %156 = arith.mulf %155, %150 : vector<8x512xf32>
    %157 = arith.mulf %145, %151 : vector<8x512xf32>
    %158 = arith.subf %156, %157 : vector<8x512xf32>
    %159 = arith.mulf %145, %150 : vector<8x512xf32>
    %160 = arith.mulf %149, %151 : vector<8x512xf32>
    %161 = arith.subf %159, %160 : vector<8x512xf32>
    %cst_9 = arith.constant 0.636619746 : f32
    %162 = vector.broadcast %cst_9 : f32 to vector<8x512xf32>
    %163 = arith.mulf %87, %162 : vector<8x512xf32>
    %cst_10 = arith.constant 5.000000e-01 : f32
    %164 = vector.broadcast %cst_10 : f32 to vector<8x512xf32>
    %165 = arith.addf %163, %164 : vector<8x512xf32>
    %166 = math.floor %165 : vector<8x512xf32>
    %cst_11 = arith.constant 1.57079637 : f32
    %167 = vector.broadcast %cst_11 : f32 to vector<8x512xf32>
    %168 = arith.mulf %166, %167 : vector<8x512xf32>
    %169 = arith.subf %87, %168 : vector<8x512xf32>
    %cst_12 = arith.constant 4.37113883E-8 : f32
    %170 = vector.broadcast %cst_12 : f32 to vector<8x512xf32>
    %171 = arith.mulf %166, %170 : vector<8x512xf32>
    %172 = arith.addf %169, %171 : vector<8x512xf32>
    %173 = arith.fptosi %166 : vector<8x512xf32> to vector<8x512xi32>
    %c3_i32 = arith.constant 3 : i32
    %174 = vector.broadcast %c3_i32 : i32 to vector<8x512xi32>
    %175 = arith.andi %173, %174 : vector<8x512xi32>
    %176 = arith.mulf %172, %172 : vector<8x512xf32>
    %cst_13 = arith.constant -1.95152956E-4 : f32
    %177 = vector.broadcast %cst_13 : f32 to vector<8x512xf32>
    %178 = arith.mulf %177, %176 : vector<8x512xf32>
    %cst_14 = arith.constant 0.00833216123 : f32
    %179 = vector.broadcast %cst_14 : f32 to vector<8x512xf32>
    %180 = arith.addf %178, %179 : vector<8x512xf32>
    %181 = arith.mulf %180, %176 : vector<8x512xf32>
    %cst_15 = arith.constant 0.166666552 : f32
    %182 = vector.broadcast %cst_15 : f32 to vector<8x512xf32>
    %183 = arith.subf %181, %182 : vector<8x512xf32>
    %184 = arith.mulf %176, %172 : vector<8x512xf32>
    %185 = arith.mulf %183, %184 : vector<8x512xf32>
    %186 = arith.addf %185, %172 : vector<8x512xf32>
    %cst_16 = arith.constant 2.44331568E-5 : f32
    %187 = vector.broadcast %cst_16 : f32 to vector<8x512xf32>
    %188 = arith.mulf %187, %176 : vector<8x512xf32>
    %cst_17 = arith.constant 0.00138873165 : f32
    %189 = vector.broadcast %cst_17 : f32 to vector<8x512xf32>
    %190 = arith.subf %188, %189 : vector<8x512xf32>
    %191 = arith.mulf %190, %176 : vector<8x512xf32>
    %cst_18 = arith.constant 0.0416666456 : f32
    %192 = vector.broadcast %cst_18 : f32 to vector<8x512xf32>
    %193 = arith.addf %191, %192 : vector<8x512xf32>
    %194 = arith.mulf %176, %176 : vector<8x512xf32>
    %195 = arith.mulf %193, %194 : vector<8x512xf32>
    %cst_19 = arith.constant 5.000000e-01 : f32
    %196 = vector.broadcast %cst_19 : f32 to vector<8x512xf32>
    %197 = arith.mulf %196, %176 : vector<8x512xf32>
    %198 = arith.subf %195, %197 : vector<8x512xf32>
    %cst_20 = arith.constant 1.000000e+00 : f32
    %199 = vector.broadcast %cst_20 : f32 to vector<8x512xf32>
    %200 = arith.addf %198, %199 : vector<8x512xf32>
    %c1_i32 = arith.constant 1 : i32
    %201 = vector.broadcast %c1_i32 : i32 to vector<8x512xi32>
    %202 = arith.andi %175, %201 : vector<8x512xi32>
    %c1_i32_21 = arith.constant 1 : i32
    %203 = vector.broadcast %c1_i32_21 : i32 to vector<8x512xi32>
    %204 = arith.cmpi eq, %202, %203 : vector<8x512xi32>
    %205 = arith.select %204, %200, %186 : vector<8x512xi1>, vector<8x512xf32>
    %206 = arith.select %204, %186, %200 : vector<8x512xi1>, vector<8x512xf32>
    %c2_i32 = arith.constant 2 : i32
    %207 = vector.broadcast %c2_i32 : i32 to vector<8x512xi32>
    %208 = arith.cmpi sge, %175, %207 : vector<8x512xi32>
    %cst_22 = arith.constant 0.000000e+00 : f32
    %209 = vector.broadcast %cst_22 : f32 to vector<8x512xf32>
    %210 = arith.subf %209, %205 : vector<8x512xf32>
    %211 = arith.select %208, %210, %205 : vector<8x512xi1>, vector<8x512xf32>
    %c1_i32_23 = arith.constant 1 : i32
    %212 = vector.broadcast %c1_i32_23 : i32 to vector<8x512xi32>
    %213 = arith.cmpi eq, %175, %212 : vector<8x512xi32>
    %c2_i32_24 = arith.constant 2 : i32
    %214 = vector.broadcast %c2_i32_24 : i32 to vector<8x512xi32>
    %215 = arith.cmpi eq, %175, %214 : vector<8x512xi32>
    %216 = arith.ori %213, %215 : vector<8x512xi1>
    %cst_25 = arith.constant 0.000000e+00 : f32
    %217 = vector.broadcast %cst_25 : f32 to vector<8x512xf32>
    %218 = arith.subf %217, %206 : vector<8x512xf32>
    %219 = arith.select %216, %218, %206 : vector<8x512xi1>, vector<8x512xf32>
    %220 = arith.mulf %152, %219 : vector<8x512xf32>
    %221 = arith.mulf %153, %211 : vector<8x512xf32>
    %222 = arith.subf %220, %221 : vector<8x512xf32>
    %223 = arith.addf %222, %158 : vector<8x512xf32>
    %c0_26 = arith.constant 0 : index
    %c0_27 = arith.constant 0 : index
    %224 = vector.load %arg5[%c0_26, %c0_27] : memref<16x512xf32, #tpu.memory_space<vmem>>, vector<8x512xf32>
    tpu.vector_store %arg5[%c0_26, %c0_27], %223 {strides = array<i32>} : memref<16x512xf32, #tpu.memory_space<vmem>>, vector<8x512xf32>,
    %225 = arith.mulf %152, %211 : vector<8x512xf32>
    %226 = arith.mulf %153, %219 : vector<8x512xf32>
    %227 = arith.addf %225, %226 : vector<8x512xf32>
    %228 = arith.addf %227, %161 : vector<8x512xf32>
    %c8 = arith.constant 8 : index
    %c0_28 = arith.constant 0 : index
    %229 = vector.load %arg5[%c8, %c0_28] : memref<16x512xf32, #tpu.memory_space<vmem>>, vector<8x512xf32>
    tpu.vector_store %arg5[%c8, %c0_28], %228 {strides = array<i32>} : memref<16x512xf32, #tpu.memory_space<vmem>>, vector<8x512xf32>,
    return
  }
  func.func @transform_0(%arg0: i32) -> (i32, i32) {
    %c0_i32 = arith.constant 0 : i32
    %c0_i32_0 = arith.constant 0 : i32
    %c0_i32_1 = arith.constant 0 : i32
    return %c0_i32, %c0_i32_0 : i32, i32
  }
  func.func @transform_1(%arg0: i32) -> (i32, i32) {
    %c0_i32 = arith.constant 0 : i32
    %c0_i32_0 = arith.constant 0 : i32
    %c0_i32_1 = arith.constant 0 : i32
    return %c0_i32, %c0_i32_0 : i32, i32
  }
  func.func @transform_2(%arg0: i32) -> (i32, i32) {
    %c0_i32 = arith.constant 0 : i32
    %c0_i32_0 = arith.constant 0 : i32
    return %c0_i32, %arg0 : i32, i32
  }
  func.func @transform_3(%arg0: i32) -> (i32, i32) {
    %c1_i32 = arith.constant 1 : i32
    %0 = arith.addi %arg0, %c1_i32 : i32
    %c4_i32 = arith.constant 4 : i32
    %1 = arith.muli %0, %c4_i32 : i32
    %c0_i32 = arith.constant 0 : i32
    %c0_i32_0 = arith.constant 0 : i32
    return %c0_i32, %1 : i32, i32
  }
  func.func @transform_4(%arg0: i32) -> (i32, i32) {
    %c0_i32 = arith.constant 0 : i32
    %c0_i32_0 = arith.constant 0 : i32
    return %c0_i32, %arg0 : i32, i32
  }
}

</mosaic_0001>

<bundles_post_ra>
// kernel: tpu_custom_call.1
= control target key start
LH: loop header
LB: loop body
LE: loop exit
PB: predicated region body
PF: predicated region fallthrough
CT: control target
= control target key end

     0   :  { %9 = vsyncpa [#allocation3], 0  ;;  %s2864_s0 = inlined_call_operand.hbm [shape: f32[8,14], index: 0, kind: input, shape index: {}]   ;;  %s2865_s1 = inlined_call_operand.hbm [shape: f32[8,7], index: 1, kind: input, shape index: {}]   ;;  %s2866_s2 = inlined_call_operand.hbm [shape: f32[16,640], index: 2, kind: input, shape index: {}]   ;;  %s2867_s3 = inlined_call_operand.hbm [shape: f32[16,640], index: 3, kind: input, shape index: {}]   ;;  %s2868_s4 = inlined_call_operand.hbm [shape: f32[16,512], index: 4, kind: output, shape index: {}]  }
   0x1   :  { %10 = vsyncpa [#allocation6], 0 }
   0x2   :  { %11 = vsyncpa [#allocation9], 0 }
   0x3   :  { %12 = vsyncpa [#allocation4], 0  ;;  %s1647_s15 = smov [#allocation5]   ;;  %s1648_s17 = smov [#allocation2]  }
   0x4   :  { %s29_s16 = sshll.u32 %s1647_s15, 4  ;;  %s19_s18 = sshll.u32 %s1648_s17, 4  ;;  %s30_s16 = int_to_ptr.vmem [resolvable:$true] %s29_s16  ;;  %s20_s18 = int_to_ptr.vmem [resolvable:$true] %s19_s18 }
   0x5   :  { %s1526_s21 = scalar_lea.hbm %s2865_s1, 128 }
   0x6   :  { %p1527_p0 = scmp.ne.s32.totalorder %s2865_s1, %s1526_s21  ;;  %p1530_p1 = scmp.lt.u32.totalorder %s1526_s21, %s2865_s1 }
   0x8   :  { %p1532_p2 = pnand %p1530_p1, %p1527_p0 }
   0xa   :  { %1535 = shalt.err (!%p1532_p2)
}
   0xb   :  { %s1536_s26 = scalar_lea.vmem %s30_s16, 128  ;;  %p1541_p4 = scmp.lt.s32.totalorder %s30_s16, %s30_s16 }
   0xc   :  { %p1537_p3 = scmp.ne.s32.totalorder %s30_s16, %s1536_s26  ;;  %p1542_p5 = scmp.lt.s32.totalorder %s1536_s26, %s1536_s26 }
   0xe   :  { %p1543_p6 = por %p1542_p5, %p1541_p4 }
  0x10   :  { %p1544_p7 = pnand %p1543_p6, %p1537_p3 }
  0x12   :  { %1547 = shalt.err (!%p1544_p7)
}
  0x13   :  { %32 = dma.hbm_to_vmem [thread:$0]  %s2865_s1, 128, %s30_s16, [#allocation6]  }
  0x14   :  { %s1548_s5 = scalar_lea.hbm %s2864_s0, 128 }
  0x15   :  { %p1549_p8 = scmp.ne.s32.totalorder %s2864_s0, %s1548_s5  ;;  %p1552_p9 = scmp.lt.u32.totalorder %s1548_s5, %s2864_s0 }
  0x17   :  { %p1554_p10 = pnand %p1552_p9, %p1549_p8 }
  0x19   :  { %1557 = shalt.err (!%p1554_p10)
}
  0x1a   :  { %s1558_s10 = scalar_lea.vmem %s20_s18, 128  ;;  %p1563_p12 = scmp.lt.s32.totalorder %s20_s18, %s20_s18 }
  0x1b   :  { %p1559_p11 = scmp.ne.s32.totalorder %s20_s18, %s1558_s10  ;;  %p1564_p13 = scmp.lt.s32.totalorder %s1558_s10, %s1558_s10 }
  0x1d   :  { %p1565_p0 = por %p1564_p13, %p1563_p12 }
  0x1f   :  { %p1566_p1 = pnand %p1565_p0, %p1559_p11 }
  0x21   :  { %1569 = shalt.err (!%p1566_p1)
}
  0x22   :  { %22 = dma.hbm_to_vmem [thread:$0]  %s2864_s0, 128, %s20_s18, [#allocation3]  }
  0x23   :  { %s1649_s12 = smov [#allocation7]   ;;  %s1570_s16 = scalar_lea.hbm %s2866_s2, 1024 }
  0x24   :  { %s38_s13 = sshll.u32 %s1649_s12, 4  ;;  %p1571_p2 = scmp.ne.s32.totalorder %s2866_s2, %s1570_s16  ;;  %s39_s13 = int_to_ptr.vmem [resolvable:$true] %s38_s13 }
  0x25   :  { %s1572_s22 = scalar_lea.hbm %s2866_s2, 1280  ;;  %p1574_p4 = scmp.lt.u32.totalorder %s1570_s16, %s2866_s2 }
  0x26   :  { %p1573_p3 = scmp.lt.u32.totalorder %s1572_s22, %s1570_s16 }
  0x28   :  { %p1575_p5 = por %p1574_p4, %p1573_p3 }
  0x2a   :  { %p1576_p6 = pnand %p1575_p5, %p1571_p2 }
  0x2c   :  { %1579 = shalt.err (!%p1576_p6)
}
  0x2d   :  { %s1580_s0 = scalar_lea.vmem %s39_s13, 1024  ;;  %p1585_p8 = scmp.lt.s32.totalorder %s39_s13, %s39_s13 }
  0x2e   :  { %p1581_p7 = scmp.ne.s32.totalorder %s39_s13, %s1580_s0  ;;  %p1586_p9 = scmp.lt.s32.totalorder %s1580_s0, %s1580_s0 }
  0x30   :  { %p1587_p10 = por %p1586_p9, %p1585_p8 }
  0x32   :  { %p1588_p11 = pnand %p1587_p10, %p1581_p7 }
  0x34   :  { %1591 = shalt.err (!%p1588_p11)
}
  0x35   :  { %s1650_s18 = smov 640   ;;  %s1651_s25 = smov 512  }
  0x36   :  { %s1652_s26 = smov 32   ;;  %s1447_s5 = scalar_lea.hbm %s2867_s3, 512 }
  0x37   :  { %44 = dma.hbm_to_vmem [thread:$0]  %s2866_s2, 1024, %s39_s13, [#allocation6], %s1650_s18, %s1651_s25, %s1652_s26  }
  0x38   :  { %s1653_s6 = smov [#allocation8]   ;;  %s1616_s10 = scalar_lea.hbm %s2867_s3, 768 }
  0x39   :  { %s54_s7 = sshll.u32 %s1653_s6, 4  ;;  %p1593_p12 = scmp.ne.s32.totalorder %s1447_s5, %s1616_s10  ;;  %s55_s7 = int_to_ptr.vmem [resolvable:$true] %s54_s7 }
  0x3a   :  { %s1594_s12 = scalar_lea.hbm %s2867_s3, 1280  ;;  %p1595_p13 = scmp.lt.u32.totalorder %s1447_s5, %s2867_s3 }
  0x3b   :  { %p1596_p0 = scmp.lt.u32.totalorder %s1594_s12, %s1616_s10  ;;  %p1598_p2 = scmp.lt.u32.totalorder %s1616_s10, %s1447_s5 }
  0x3d   :  { %p1597_p1 = por %p1596_p0, %p1595_p13 }
  0x3f   :  { %p1599_p3 = por %p1598_p2, %p1597_p1 }
  0x41   :  { %p1600_p4 = pnand %p1599_p3, %p1593_p12 }
  0x43   :  { %1603 = shalt.err (!%p1600_p4)
}
  0x44   :  { %s1604_s2 = scalar_lea.vmem %s55_s7, 256  ;;  %p1609_p6 = scmp.lt.s32.totalorder %s55_s7, %s55_s7 }
  0x45   :  { %p1605_p5 = scmp.ne.s32.totalorder %s55_s7, %s1604_s2  ;;  %p1610_p7 = scmp.lt.s32.totalorder %s1604_s2, %s1604_s2 }
  0x47   :  { %p1611_p8 = por %p1610_p7, %p1609_p6 }
  0x49   :  { %p1612_p9 = pnand %p1611_p8, %p1605_p5 }
  0x4b   :  { %1615 = shalt.err (!%p1612_p9)
}
  0x4c   :  { %s1654_s13 = smov 128   ;;  %s1655_s16 = smov 8  }
  0x4d   :  { %60 = dma.hbm_to_vmem [thread:$0]  %s1447_s5, 256, %s55_s7, [#allocation9], %s1650_s18, %s1654_s13, %s1655_s16  }
  0x4e   :  { %1639 = dma.done.wait [#allocation3], 128  }
  0x4f   :  { %1640 = vsyncadd [#allocation3], 4294967168 }
  0x50   :  { %1641 = dma.done.wait [#allocation6], 1152  }
  0x51   :  { %1642 = vsyncadd [#allocation6], 4294966144 }
  0x52   :  { %1643 = dma.done.wait [#allocation9], 256  }
  0x53   :  { %1644 = vsyncadd [#allocation9], 4294967040  ;;  %v1656_v0 = vmov 0   ;;  %v1657_v1 = vmov 3   ;;  %v140_v2 = vld [vmem:[#allocation2] sm:$0xff]  ;;  %v1658_v3 = vmov 1  }
  0x54   :  { %1495 = vset.pattern.permute.xlu0 %v1656_v0  ;;  %1497 = vset.pattern.permute.xlu1 %v1657_v1  ;;  %v1659_v4 = vmov 4   ;;  %v1660_v5 = vmov 8   ;;  %v1661_v6 = vmov 5   ;;  %v1662_v7 = vmov 9   ;;  %v1758_v13 = vld [vmem:[#allocation5] sm:$0xff]  ;;  %v1770_v18 = vld [vmem:[#allocation7] sm:$0xff] }
  0x55   :  { %144 = vperm.xlu0 %1495, %v140_v2   ;;  %226 = vperm.xlu1 %1497, %v140_v2   ;;  %v1663_v8 = vmov 6   ;;  %v1664_v9 = vmov 12   ;;  %v1665_v10 = vmov 7   ;;  %v1666_v11 = vmov 2   ;;  %v1766_v16 = vld [vmem:[#allocation7 + $0x18] sm:$0xff]  ;;  %v1772_v19 = vld [vmem:[#allocation7 + $0x20] sm:$0xff] }
  0x56   :  { %v1667_v12 = vmov 10   ;;  %v1668_v14 = vmov 11   ;;  %v1669_v15 = vmov 13   ;;  %v1768_v17 = vld [vmem:[#allocation7 + $0x38] sm:$0xff]  ;;  %v98_v21 = vmul.f32 %v1766_v16, %v1766_v16  ;;  %v1784_v25 = vld [vmem:[#allocation7 + $0x8] sm:$0xff]  ;;  %v1796_v32 = vld [vmem:[#allocation7 + $0x10] sm:$0xff] }
  0x57   :  { %v103_v22 = vmul.f32 %v1768_v17, %v1768_v17  ;;  %v95_v23 = vmul.f32 %v1770_v18, %v1770_v18  ;;  %v100_v24 = vmul.f32 %v1772_v19, %v1772_v19  ;;  %v1786_v26 = vld [vmem:[#allocation7 + $0x28] sm:$0xff]  ;;  %v96_v29 = vmul.f32 %v1784_v25, %v1784_v25  ;;  %v1798_v33 = vld [vmem:[#allocation7 + $0x30] sm:$0xff]  ;;  %v1802_v36 = vld [vmem:[#allocation8] sm:$0xff]  ;;  %s1670_s3 = smov 127   ;;  %s1671_s17 = smov 126  }
  0x58   :  { %v101_v30 = vmul.f32 %v1786_v26, %v1786_v26  ;;  %v1804_v37 = vld [vmem:[#allocation8 + $0x8] sm:$0xff]  ;;  %v97_v39 = vmul.f32 %v1796_v32, %v1796_v32  ;;  %v102_v40 = vmul.f32 %v1798_v33, %v1798_v33  ;;  %v99_v43 = vmul.f32 %v1802_v36, %v1802_v36  ;;  %s1672_s19 = smov 125   ;;  %s1673_s20 = smov 124  }
  0x59   :  { %1496 = vset.pattern.permute.xlu0 %v1658_v3  ;;  %1498 = vset.pattern.permute.xlu1 %v1659_v4  ;;  %v1788_v27 = vadd.f32 %v103_v22, %v98_v21  ;;  %v1790_v28 = vadd.f32 %v100_v24, %v95_v23  ;;  %v104_v44 = vmul.f32 %v1804_v37, %v1804_v37  ;;  %s1674_s21 = smov 123   ;;  %s1675_s22 = smov 122   ;;  %vm175_vm0 = vcmask 1039360  }
  0x5a   :  { %152 = vperm.xlu0 %1496, %v140_v2   ;;  %263 = vperm.xlu1 %1498, %v140_v2   ;;  %v1808_v38 = vadd.f32 %v101_v30, %v96_v29  ;;  %v1822_v45 = vadd.f32 %v102_v40, %v97_v39  ;;  %vm212_vm1 = vcmask 1031168   ;;  %vm249_vm2 = vcmask 1022976   ;;  %s1676_s23 = smov 3   ;;  %s1677_s24 = smov [#allocation10]  }
  0x5b   :  { %v1825_v47 = vadd.f32 %v104_v44, %v99_v43  ;;  %v1893_v30 = vrot.slane %v1788_v27, 4  ;;  %vm286_vm3 = vcmask 1014784   ;;  %vm323_vm4 = vcmask 1006592   ;;  %s1433_s0 = sshll.u32 %s1677_s24, 4  ;;  %s1434_s0 = int_to_ptr.vmem [resolvable:$true] %s1433_s0 }
  0x5c   :  { %v1885_v23 = vrot.slane %v1808_v38, 4  ;;  %v1903_v39 = vrot.slane %v1822_v45, 4  ;;  %vm360_vm5 = vcmask 998400   ;;  %s1617_s18 = scalar_lea.vmem %s1434_s0, 1024  ;;  %p1622_p11 = scmp.lt.s32.totalorder %s1434_s0, %s1434_s0 }
  0x5d   :  { %v1906_v40 = vrot.slane %v1825_v47, 4  ;;  %p1618_p10 = scmp.ne.s32.totalorder %s1434_s0, %s1617_s18  ;;  %p1623_p12 = scmp.lt.s32.totalorder %s1617_s18, %s1617_s18 }
  0x5e   :  { %1502 = vset.pattern.permute.xlu0 %v1660_v5  ;;  %1499 = vset.pattern.permute.xlu1 %v1661_v6 }
  0x5f   :  { %391 = vperm.xlu0 %1502, %v140_v2   ;;  %300 = vperm.xlu1 %1499, %v140_v2   ;;  %p1624_p13 = por %p1623_p12, %p1622_p11 }
  0x61   :  { %p1625_p0 = pnand %p1624_p13, %p1618_p10 }
  0x63   :  { %1503 = vset.pattern.permute.xlu0 %v1662_v7  ;;  %1500 = vset.pattern.permute.xlu1 %v1663_v8 }
  0x64   :  { %427 = vperm.xlu0 %1503, %v140_v2   ;;  %337 = vperm.xlu1 %1500, %v140_v2  }
  0x68   :  { %1506 = vset.pattern.permute.xlu0 %v1664_v9  ;;  %1501 = vset.pattern.permute.xlu1 %v1665_v10 }
  0x69   :  { %535 = vperm.xlu0 %1506, %v140_v2   ;;  %379 = vperm.xlu1 %1501, %v140_v2  }
  0x6d   :  { %1507 = vset.pattern.permute.xlu0 %v1666_v11  ;;  %1504 = vset.pattern.permute.xlu1 %v1667_v12 }
  0x6e   :  { %189 = vperm.xlu0 %1507, %v140_v2   ;;  %463 = vperm.xlu1 %1504, %v140_v2  }
  0x72   :  { %688 = vperm.xlu0 %1507, %v1758_v13   ;;  %1505 = vset.pattern.permute.xlu1 %v1668_v14 }
  0x73   :  { %499 = vperm.xlu1 %1505, %v140_v2  }
  0x76   :  { %1512 = vset.pattern.permute.xlu0 %v1661_v6 }
  0x77   :  { %1508 = vset.pattern.permute.xlu1 %v1669_v15  ;;  %892 = vperm.xlu0 %1512, %v1758_v13   ;;  %v1877_v15 = vrot.slane %v1790_v28, 4 }
  0x78   :  { %571 = vperm.xlu1 %1508, %v140_v2  }
  0x7b   :  { %1515 = vset.pattern.permute.xlu0 %v1663_v8 }
  0x7c   :  { %1509 = vset.pattern.permute.xlu1 %v1658_v3 }
  0x7d   :  { %620 = vperm.xlu1 %1509, %v1758_v13  }
  0x81   :  { %1510 = vset.pattern.permute.xlu1 %v1657_v1 }
  0x82   :  { %756 = vperm.xlu1 %1510, %v1758_v13  }
  0x86   :  { %1511 = vset.pattern.permute.xlu1 %v1659_v4 }
  0x87   :  { %824 = vperm.xlu1 %1511, %v1758_v13  }
  0x8b   :  { %1513 = vset.pattern.permute.xlu1 %v1663_v8 }
  0x8c   :  { %960 = vperm.xlu1 %1513, %v1758_v13  }
  0x90   :  { %1514 = vset.pattern.permute.xlu1 %v1656_v0 }
  0xd4   :  { %v1774_v20 = vpop.permute.xlu0 %144  ;;  %v227_v54 = vpop.permute.xlu1 %226 }
  0xd5   :  { %v229_v57 = vmul.f32 %v227_v54, %v1790_v28  ;;  %v231_v59 = vmul.f32 %v227_v54, %v1822_v45  ;;  %v230_v60 = vmul.f32 %v227_v54, %v1808_v38  ;;  %v233_v62 = vmul.f32 %v227_v54, %v1825_v47 }
  0xd6   :  { %v232_v63 = vmul.f32 %v227_v54, %v1788_v27 }
  0xd9   :  { %v153_v31 = vpop.permute.xlu0 %152  ;;  %v264_v61 = vpop.permute.xlu1 %263 }
  0xda   :  { %v158_v34 = vmul.f32 %v153_v31, %v1788_v27  ;;  %v155_v35 = vmul.f32 %v153_v31, %v1790_v28  ;;  %v156_v42 = vmul.f32 %v153_v31, %v1808_v38  ;;  %v157_v46 = vmul.f32 %v153_v31, %v1822_v45 }
  0xdb   :  { %v159_v49 = vmul.f32 %v153_v31, %v1825_v47  ;;  %v266_v0 = vmul.f32 %v264_v61, %v1790_v28  ;;  %v267_v1 = vmul.f32 %v264_v61, %v1808_v38  ;;  %v268_v3 = vmul.f32 %v264_v61, %v1822_v45 }
  0xdc   :  { %171 = vrot.lane.b32.xlu0 %v158_v34, %s1670_s3  ;;  %165 = vrot.lane.b32.xlu1 %v155_v35, %s1670_s3  ;;  %v269_v4 = vmul.f32 %v264_v61, %v1788_v27  ;;  %v270_v6 = vmul.f32 %v264_v61, %v1825_v47 }
  0xde   :  { %v1814_v41 = vpop.permute.xlu0 %391  ;;  %v301_v2 = vpop.permute.xlu1 %300 }
  0xdf   :  { %v304_v5 = vmul.f32 %v301_v2, %v1808_v38  ;;  %v303_v8 = vmul.f32 %v301_v2, %v1790_v28  ;;  %v306_v9 = vmul.f32 %v301_v2, %v1788_v27  ;;  %v305_v11 = vmul.f32 %v301_v2, %v1822_v45 }
  0xe0   :  { %167 = vrot.lane.b32.xlu1 %v156_v42, %s1670_s3  ;;  %v307_v12 = vmul.f32 %v301_v2, %v1825_v47  ;;  %v394_v22 = vmul.f32 %v1814_v41, %v1877_v15  ;;  %v395_v29 = vmul.f32 %v1814_v41, %v1885_v23  ;;  %v397_v35 = vmul.f32 %v1814_v41, %v1893_v30 }
  0xe1   :  { %v396_v43 = vmul.f32 %v1814_v41, %v1903_v39  ;;  %v398_v44 = vmul.f32 %v1814_v41, %v1906_v40 }
  0xe3   :  { %v1827_v48 = vpop.permute.xlu0 %427  ;;  %v338_v7 = vpop.permute.xlu1 %337 }
  0xe4   :  { %169 = vrot.lane.b32.xlu1 %v157_v46, %s1670_s3  ;;  %v341_v10 = vmul.f32 %v338_v7, %v1808_v38  ;;  %v343_v14 = vmul.f32 %v338_v7, %v1788_v27  ;;  %v340_v21 = vmul.f32 %v338_v7, %v1790_v28  ;;  %v342_v24 = vmul.f32 %v338_v7, %v1822_v45 }
  0xe5   :  { %v344_v34 = vmul.f32 %v338_v7, %v1825_v47  ;;  %v430_v46 = vmul.f32 %v1827_v48, %v1877_v15  ;;  %v433_v41 = vmul.f32 %v1827_v48, %v1893_v30  ;;  %v434_v54 = vmul.f32 %v1827_v48, %v1906_v40 }
  0xe8   :  { %v1831_v50 = vpop.permute.xlu0 %535  ;;  %173 = vrot.lane.b32.xlu1 %v159_v49, %s1670_s3  ;;  %v1895_v31 = vpop.permute.xlu1 %379 }
  0xe9   :  { %v538_v2 = vmul.f32 %v1831_v50, %v1877_v15  ;;  %v541_v7 = vmul.f32 %v1831_v50, %v1893_v30 }
  0xed   :  { %v190_v51 = vpop.permute.xlu0 %189  ;;  %v464_v42 = vpop.permute.xlu1 %463 }
  0xee   :  { %v194_v52 = vmul.f32 %v190_v51, %v1822_v45  ;;  %v192_v53 = vmul.f32 %v190_v51, %v1790_v28  ;;  %v196_v55 = vmul.f32 %v190_v51, %v1825_v47  ;;  %v193_v56 = vmul.f32 %v190_v51, %v1808_v38 }
  0xef   :  { %v195_v58 = vmul.f32 %v190_v51, %v1788_v27  ;;  %v431_v47 = vmul.f32 %v1827_v48, %v1885_v23  ;;  %v432_v51 = vmul.f32 %v1827_v48, %v1903_v39 }
  0xf0   :  { %206 = vrot.lane.b32.xlu0 %v194_v52, %s1671_s17  ;;  %202 = vrot.lane.b32.xlu1 %v192_v53, %s1671_s17  ;;  %v466_v52 = vmul.f32 %v464_v42, %v1877_v15 }
  0xf2   :  { %v500_v49 = vpop.permute.xlu1 %499 }
  0xf3   :  { %v502_v48 = vmul.f32 %v500_v49, %v1877_v15 }
  0xf4   :  { %210 = vrot.lane.b32.xlu0 %v196_v55, %s1671_s17  ;;  %204 = vrot.lane.b32.xlu1 %v193_v56, %s1671_s17  ;;  %v467_v55 = vmul.f32 %v464_v42, %v1885_v23  ;;  %v468_v56 = vmul.f32 %v464_v42, %v1903_v39 }
  0xf7   :  { %v572_v53 = vpop.permute.xlu1 %571 }
  0xf8   :  { %239 = vrot.lane.b32.xlu0 %v229_v57, %s1672_s19  ;;  %208 = vrot.lane.b32.xlu1 %v195_v58, %s1671_s17  ;;  %v469_v58 = vmul.f32 %v464_v42, %v1893_v30 }
  0xfc   :  { %243 = vrot.lane.b32.xlu0 %v231_v59, %s1672_s19  ;;  %241 = vrot.lane.b32.xlu1 %v230_v60, %s1672_s19  ;;  %v1935_v57 = vpop.permute.xlu1 %620  ;;  %v470_v59 = vmul.f32 %v464_v42, %v1906_v40  ;;  %v503_v60 = vmul.f32 %v500_v49, %v1885_v23  ;;  %v2004_v42 = vrot.slane %v1768_v17, 4 }
  0xfe   :  { %2891 = vst [vmem:[#allocation21_spill] sm:$0xff] %v2004_v42 }
 0x100   :  { %247 = vrot.lane.b32.xlu0 %v233_v62, %s1672_s19  ;;  %245 = vrot.lane.b32.xlu1 %v232_v63, %s1672_s19  ;;  %v504_v62 = vmul.f32 %v500_v49, %v1903_v39  ;;  %v505_v63 = vmul.f32 %v500_v49, %v1893_v30 }
 0x101   :  { %v1945_v61 = vpop.permute.xlu1 %756 }
 0x104   :  { %276 = vrot.lane.b32.xlu0 %v266_v0, %s1673_s20  ;;  %278 = vrot.lane.b32.xlu1 %v267_v1, %s1673_s20  ;;  %v506_v1 = vmul.f32 %v500_v49, %v1906_v40 }
 0x106   :  { %v1951_v0 = vpop.permute.xlu1 %824 }
 0x108   :  { %280 = vrot.lane.b32.xlu0 %v268_v3, %s1673_s20  ;;  %282 = vrot.lane.b32.xlu1 %v269_v4, %s1673_s20  ;;  %v539_v4 = vmul.f32 %v1831_v50, %v1885_v23 }
 0x10b   :  { %v1960_v3 = vpop.permute.xlu1 %960 }
 0x10c   :  { %284 = vrot.lane.b32.xlu0 %v270_v6, %s1673_s20  ;;  %315 = vrot.lane.b32.xlu1 %v304_v5, %s1674_s21  ;;  %2885 = vst [vmem:[#allocation15_spill] sm:$0xff] %v1960_v3  ;;  %v540_v5 = vmul.f32 %v1831_v50, %v1903_v39 }
 0x110   :  { %313 = vrot.lane.b32.xlu0 %v303_v8, %s1674_s21  ;;  %319 = vrot.lane.b32.xlu1 %v306_v9, %s1674_s21  ;;  %v542_v8 = vmul.f32 %v1831_v50, %v1906_v40  ;;  %v1988_v50 = vrot.slane %v1786_v26, 4 }
 0x112   :  { %2887 = vst [vmem:[#allocation17_spill] sm:$0xff] %v1988_v50  ;;  %v131_v49 = vmul.f32 %v1988_v50, %v1784_v25 }
 0x114   :  { %317 = vrot.lane.b32.xlu0 %v305_v11, %s1674_s21  ;;  %352 = vrot.lane.b32.xlu1 %v341_v10, %s1675_s22  ;;  %v574_v10 = vmul.f32 %v572_v53, %v1877_v15  ;;  %v575_v11 = vmul.f32 %v572_v53, %v1885_v23 }
 0x118   :  { %321 = vrot.lane.b32.xlu0 %v307_v12, %s1674_s21  ;;  %356 = vrot.lane.b32.xlu1 %v343_v14, %s1675_s22  ;;  %v1981_v12 = vrot.slane %v1784_v25, 4  ;;  %v1983_v14 = vpop.permute.xlu0 %688 }
 0x11a   :  { %2886 = vst [vmem:[#allocation16_spill] sm:$0xff] %v1981_v12 }
 0x11c   :  { %350 = vrot.lane.b32.xlu0 %v340_v21, %s1675_s22  ;;  %404 = vrot.lane.b32.xlu1 %v394_v22, %s1670_s3  ;;  %v1991_v21 = vrot.slane %v1770_v18, 4  ;;  %v1994_v22 = vrot.slane %v1772_v19, 4 }
 0x11e   :  { %2888 = vst [vmem:[#allocation18_spill] sm:$0xff] %v1991_v21  ;;  %2889 = vst [vmem:[#allocation19_spill] sm:$0xff] %v1994_v22 }
 0x120   :  { %354 = vrot.lane.b32.xlu0 %v342_v24, %s1675_s22  ;;  %406 = vrot.lane.b32.xlu1 %v395_v29, %s1670_s3  ;;  %v576_v24 = vmul.f32 %v572_v53, %v1903_v39  ;;  %v577_v29 = vmul.f32 %v572_v53, %v1893_v30 }
 0x124   :  { %358 = vrot.lane.b32.xlu0 %v344_v34, %s1675_s22  ;;  %410 = vrot.lane.b32.xlu1 %v397_v35, %s1670_s3  ;;  %v1999_v34 = vrot.slane %v1766_v16, 4  ;;  %v126_v35 = vmul.f32 %v1981_v12, %v1786_v26 }
 0x126   :  { %2890 = vst [vmem:[#allocation20_spill] sm:$0xff] %v1999_v34 }
 0x128   :  { %408 = vrot.lane.b32.xlu0 %v396_v43, %s1670_s3  ;;  %412 = vrot.lane.b32.xlu1 %v398_v44, %s1670_s3  ;;  %v2007_v43 = vrot.slane %v1796_v32, 4  ;;  %v2010_v44 = vrot.slane %v1798_v33, 4 }
 0x12a   :  { %2892 = vst [vmem:[#allocation22_spill] sm:$0xff] %v2007_v43  ;;  %2893 = vst [vmem:[#allocation23_spill] sm:$0xff] %v2010_v44 }
 0x12c   :  { %440 = vrot.lane.b32.xlu0 %v430_v46, %s1671_s17  ;;  %442 = vrot.lane.b32.xlu1 %v431_v47, %s1671_s17  ;;  %v2012_v46 = vpop.permute.xlu0 %892 }
 0x130   :  { %444 = vrot.lane.b32.xlu0 %v432_v51, %s1671_s17  ;;  %446 = vrot.lane.b32.xlu1 %v433_v41, %s1671_s17  ;;  %v125_v51 = vmul.f32 %v1991_v21, %v1772_v19  ;;  %v130_v41 = vmul.f32 %v1994_v22, %v1770_v18 }
 0x134   :  { %448 = vrot.lane.b32.xlu0 %v434_v54, %s1671_s17  ;;  %476 = vrot.lane.b32.xlu1 %v466_v52, %s1672_s19  ;;  %v578_v52 = vmul.f32 %v572_v53, %v1906_v40  ;;  %v128_v54 = vmul.f32 %v1999_v34, %v1768_v17  ;;  %v2040_v40 = vrot.slane %v1802_v36, 4  ;;  %v2043_v53 = vrot.slane %v1804_v37, 4 }
 0x136   :  { %2894 = vst [vmem:[#allocation24_spill] sm:$0xff] %v2040_v40  ;;  %2895 = vst [vmem:[#allocation25_spill] sm:$0xff] %v2043_v53 }
 0x138   :  { %478 = vrot.lane.b32.xlu0 %v467_v55, %s1672_s19  ;;  %480 = vrot.lane.b32.xlu1 %v468_v56, %s1672_s19  ;;  %v133_v55 = vmul.f32 %v2004_v42, %v1766_v16  ;;  %v127_v56 = vmul.f32 %v2007_v43, %v1798_v33 }
 0x13c   :  { %482 = vrot.lane.b32.xlu0 %v469_v58, %s1672_s19  ;;  %484 = vrot.lane.b32.xlu1 %v470_v59, %s1672_s19  ;;  %v132_v58 = vmul.f32 %v2010_v44, %v1796_v32  ;;  %v2035_v59 = vsub.f32 %v126_v35, %v131_v49  ;;  %v116_v35 = vmul.f32 %v1988_v50, %v1786_v26 }
 0x140   :  { %512 = vrot.lane.b32.xlu0 %v502_v48, %s1673_s20  ;;  %514 = vrot.lane.b32.xlu1 %v503_v60, %s1673_s20  ;;  %v2037_v48 = vsub.f32 %v125_v51, %v130_v41  ;;  %v112_v51 = vmul.f32 %v2007_v43, %v1796_v32  ;;  %v117_v41 = vmul.f32 %v2010_v44, %v1798_v33 }
 0x141   :  { %v118_v32 = vmul.f32 %v2004_v42, %v1768_v17 }
 0x142   :  { %v2105_v33 = vadd.f32 %v117_v41, %v112_v51  ;;  %v724_v51 = vmul.f32 %v1983_v14, %v2035_v59 }
 0x144   :  { %516 = vrot.lane.b32.xlu0 %v504_v62, %s1673_s20  ;;  %518 = vrot.lane.b32.xlu1 %v505_v63, %s1673_s20  ;;  %v656_v63 = vmul.f32 %v1935_v57, %v2035_v59  ;;  %v625_v17 = vmul.f32 %v1935_v57, %v2105_v33 }
 0x148   :  { %520 = vrot.lane.b32.xlu0 %v506_v1, %s1673_s20  ;;  %548 = vrot.lane.b32.xlu1 %v538_v2, %s1674_s21  ;;  %v2053_v1 = vsub.f32 %v128_v54, %v133_v55  ;;  %v110_v2 = vmul.f32 %v1991_v21, %v1770_v18 }
 0x14a   :  { %v658_v18 = vmul.f32 %v1935_v57, %v2053_v1 }
 0x14c   :  { %550 = vrot.lane.b32.xlu0 %v539_v4, %s1674_s21  ;;  %552 = vrot.lane.b32.xlu1 %v540_v5, %s1674_s21  ;;  %v115_v4 = vmul.f32 %v1994_v22, %v1772_v19  ;;  %v2061_v5 = vsub.f32 %v127_v56, %v132_v58  ;;  %v113_v56 = vmul.f32 %v1999_v34, %v1766_v16 }
 0x14d   :  { %v114_v58 = vmul.f32 %v2040_v40, %v1802_v36 }
 0x14e   :  { %v1968_v6 = vpop.permute.xlu1 %165  ;;  %v2045_v60 = vpop.permute.xlu0 %171  ;;  %v657_v19 = vmul.f32 %v1935_v57, %v2061_v5 }
 0x150   :  { %554 = vrot.lane.b32.xlu0 %v541_v7, %s1674_s21  ;;  %556 = vrot.lane.b32.xlu1 %v542_v8, %s1674_s21  ;;  %v129_v7 = vmul.f32 %v2040_v40, %v1804_v37  ;;  %v134_v8 = vmul.f32 %v2043_v53, %v1802_v36 }
 0x152   :  { %v1976_v9 = vpop.permute.xlu1 %167  ;;  %v2083_v49 = vsub.f32 %v129_v7, %v134_v8 }
 0x154   :  { %584 = vrot.lane.b32.xlu0 %v574_v10, %s1675_s22  ;;  %586 = vrot.lane.b32.xlu1 %v575_v11, %s1675_s22 }
 0x156   :  { %v2014_v47 = vpop.permute.xlu1 %169 }
 0x158   :  { %588 = vrot.lane.b32.xlu0 %v576_v24, %s1675_s22  ;;  %590 = vrot.lane.b32.xlu1 %v577_v29, %s1675_s22  ;;  %v2075_v24 = vadd.f32 %v115_v4, %v110_v2  ;;  %v111_v29 = vmul.f32 %v1981_v12, %v1784_v25  ;;  %v659_v25 = vmul.f32 %v1935_v57, %v2083_v49 }
 0x159   :  { %v2121_v4 = vadd.f32 %v118_v32, %v113_v56 }
 0x15a   :  { %v2047_v62 = vpop.permute.xlu1 %173  ;;  %v623_v26 = vmul.f32 %v1935_v57, %v2075_v24  ;;  %v2097_v55 = vadd.f32 %v116_v35, %v111_v29  ;;  %v723_v35 = vmul.f32 %v1983_v14, %v2037_v48 }
 0x15b   :  { %v626_v8 = vmul.f32 %v1935_v57, %v2121_v4 }
 0x15c   :  { %592 = vrot.lane.b32.xlu0 %v578_v52, %s1675_s22  ;;  %608 = vperm.xlu1 %1514, %v1758_v13   ;;  %v655_v13 = vmul.f32 %v1935_v57, %v2037_v48  ;;  %v624_v16 = vmul.f32 %v1935_v57, %v2097_v55 }
 0x160   :  { %667 = vrot.lane.b32.xlu1 %v656_v63, %s1670_s3  ;;  %665 = vrot.lane.b32.xlu0 %v655_v13, %s1670_s3  ;;  %v119_v63 = vmul.f32 %v2043_v53, %v1804_v37 }
 0x162   :  { %v2067_v10 = vpop.permute.xlu0 %206  ;;  %v2069_v11 = vpop.permute.xlu1 %202  ;;  %v2123_v36 = vadd.f32 %v119_v63, %v114_v58  ;;  %v727_v58 = vmul.f32 %v1983_v14, %v2083_v49  ;;  %v691_v63 = vmul.f32 %v1983_v14, %v2075_v24 }
 0x164   :  { %671 = vrot.lane.b32.xlu1 %v658_v18, %s1670_s3  ;;  %669 = vrot.lane.b32.xlu0 %v657_v19, %s1670_s3  ;;  %v627_v18 = vmul.f32 %v1935_v57, %v2123_v36 }
 0x166   :  { %v2089_v52 = vpop.permute.xlu0 %210  ;;  %v2091_v54 = vpop.permute.xlu1 %204 }
 0x168   :  { %673 = vrot.lane.b32.xlu0 %v659_v25, %s1670_s3  ;;  %633 = vrot.lane.b32.xlu1 %v623_v26, %s1670_s3  ;;  %v725_v25 = vmul.f32 %v1983_v14, %v2061_v5  ;;  %v726_v26 = vmul.f32 %v1983_v14, %v2053_v1 }
 0x16a   :  { %v2111_v13 = vpop.permute.xlu0 %239  ;;  %v2113_v2 = vpop.permute.xlu1 %208 }
 0x16c   :  { %635 = vrot.lane.b32.xlu0 %v624_v16, %s1670_s3  ;;  %637 = vrot.lane.b32.xlu1 %v625_v17, %s1670_s3 }
 0x16e   :  { %v2125_v7 = vpop.permute.xlu0 %243  ;;  %v2127_v37 = vpop.permute.xlu1 %241 }
 0x170   :  { %639 = vrot.lane.b32.xlu0 %v626_v8, %s1670_s3  ;;  %641 = vrot.lane.b32.xlu1 %v627_v18, %s1670_s3  ;;  %v692_v8 = vmul.f32 %v1983_v14, %v2097_v55  ;;  %v693_v18 = vmul.f32 %v1983_v14, %v2105_v33 }
 0x172   :  { %v2135_v19 = vpop.permute.xlu0 %247  ;;  %v2137_v29 = vpop.permute.xlu1 %245 }
 0x174   :  { %733 = vrot.lane.b32.xlu0 %v723_v35, %s1671_s17  ;;  %735 = vrot.lane.b32.xlu1 %v724_v51, %s1671_s17 }
 0x176   :  { %v2145_v41 = vpop.permute.xlu0 %276  ;;  %v2147_v57 = vpop.permute.xlu1 %278 }
 0x178   :  { %737 = vrot.lane.b32.xlu0 %v725_v25, %s1671_s17  ;;  %739 = vrot.lane.b32.xlu1 %v726_v26, %s1671_s17  ;;  %v694_v25 = vmul.f32 %v1983_v14, %v2121_v4  ;;  %v695_v26 = vmul.f32 %v1983_v14, %v2123_v36 }
 0x17a   :  { %v2155_v56 = vpop.permute.xlu0 %280  ;;  %v2157_v32 = vpop.permute.xlu1 %282 }
 0x17c   :  { %741 = vrot.lane.b32.xlu0 %v727_v58, %s1671_s17  ;;  %701 = vrot.lane.b32.xlu1 %v691_v63, %s1671_s17 }
 0x17e   :  { %v2165_v16 = vpop.permute.xlu0 %284  ;;  %v2167_v17 = vpop.permute.xlu1 %315 }
 0x180   :  { %703 = vrot.lane.b32.xlu0 %v692_v8, %s1671_s17  ;;  %705 = vrot.lane.b32.xlu1 %v693_v18, %s1671_s17  ;;  %v791_v8 = vmul.f32 %v1945_v61, %v2037_v48  ;;  %v792_v18 = vmul.f32 %v1945_v61, %v2035_v59 }
 0x182   :  { %v2175_v35 = vpop.permute.xlu0 %313  ;;  %v2177_v51 = vpop.permute.xlu1 %319 }
 0x184   :  { %707 = vrot.lane.b32.xlu0 %v694_v25, %s1671_s17  ;;  %709 = vrot.lane.b32.xlu1 %v695_v26, %s1671_s17  ;;  %v793_v25 = vmul.f32 %v1945_v61, %v2061_v5  ;;  %v794_v26 = vmul.f32 %v1945_v61, %v2053_v1 }
 0x186   :  { %v2185_v58 = vpop.permute.xlu0 %317  ;;  %v2187_v63 = vpop.permute.xlu1 %352 }
 0x188   :  { %801 = vrot.lane.b32.xlu0 %v791_v8, %s1672_s19  ;;  %803 = vrot.lane.b32.xlu1 %v792_v18, %s1672_s19  ;;  %v795_v8 = vmul.f32 %v1945_v61, %v2083_v49  ;;  %v759_v18 = vmul.f32 %v1945_v61, %v2075_v24 }
 0x18a   :  { %v2195_v53 = vpop.permute.xlu0 %321  ;;  %v2197_v14 = vpop.permute.xlu1 %356 }
 0x18c   :  { %805 = vrot.lane.b32.xlu0 %v793_v25, %s1672_s19  ;;  %807 = vrot.lane.b32.xlu1 %v794_v26, %s1672_s19  ;;  %v760_v25 = vmul.f32 %v1945_v61, %v2097_v55  ;;  %v761_v26 = vmul.f32 %v1945_v61, %v2105_v33 }
 0x18e   :  { %v2205_v42 = vpop.permute.xlu0 %350  ;;  %v2207_v44 = vpop.permute.xlu1 %404 }
 0x190   :  { %809 = vrot.lane.b32.xlu0 %v795_v8, %s1672_s19  ;;  %769 = vrot.lane.b32.xlu1 %v759_v18, %s1672_s19  ;;  %v762_v8 = vmul.f32 %v1945_v61, %v2121_v4  ;;  %v763_v18 = vmul.f32 %v1945_v61, %v2123_v36 }
 0x192   :  { %v2215_v50 = vpop.permute.xlu0 %354  ;;  %v2217_v22 = vpop.permute.xlu1 %406 }
 0x194   :  { %771 = vrot.lane.b32.xlu0 %v760_v25, %s1672_s19  ;;  %773 = vrot.lane.b32.xlu1 %v761_v26, %s1672_s19  ;;  %v859_v25 = vmul.f32 %v1951_v0, %v2037_v48  ;;  %v860_v26 = vmul.f32 %v1951_v0, %v2035_v59 }
 0x196   :  { %v2225_v40 = vpop.permute.xlu0 %358  ;;  %v2227_v34 = vpop.permute.xlu1 %410 }
 0x197   :  { %2896 = vst [vmem:[#allocation26_spill] sm:$0xff] %v2227_v34 }
 0x198   :  { %775 = vrot.lane.b32.xlu0 %v762_v8, %s1672_s19  ;;  %777 = vrot.lane.b32.xlu1 %v763_v18, %s1672_s19  ;;  %v861_v8 = vmul.f32 %v1951_v0, %v2061_v5  ;;  %v862_v18 = vmul.f32 %v1951_v0, %v2053_v1 }
 0x19a   :  { %v2235_v43 = vpop.permute.xlu0 %408  ;;  %v2237_v12 = vpop.permute.xlu1 %412 }
 0x19b   :  { %2897 = vst [vmem:[#allocation27_spill] sm:$0xff] %v2235_v43  ;;  %2898 = vst [vmem:[#allocation28_spill] sm:$0xff] %v2237_v12 }
 0x19c   :  { %869 = vrot.lane.b32.xlu0 %v859_v25, %s1673_s20  ;;  %871 = vrot.lane.b32.xlu1 %v860_v26, %s1673_s20  ;;  %v863_v25 = vmul.f32 %v1951_v0, %v2083_v49  ;;  %v827_v26 = vmul.f32 %v1951_v0, %v2075_v24 }
 0x19e   :  { %v2245_v21 = vpop.permute.xlu0 %440  ;;  %v2247_v61 = vpop.permute.xlu1 %442 }
 0x1a0   :  { %873 = vrot.lane.b32.xlu0 %v861_v8, %s1673_s20  ;;  %875 = vrot.lane.b32.xlu1 %v862_v18, %s1673_s20  ;;  %v828_v18 = vmul.f32 %v1951_v0, %v2097_v55 }
 0x1a2   :  { %v2255_v12 = vpop.permute.xlu0 %444  ;;  %v2257_v34 = vpop.permute.xlu1 %446 }
 0x1a3   :  { %2899 = vst [vmem:[#allocation29_spill] sm:$0xff] %v2255_v12  ;;  %2900 = vst [vmem:[#allocation30_spill] sm:$0xff] %v2257_v34  ;;  %v829_v34 = vmul.f32 %v1951_v0, %v2105_v33 }
 0x1a4   :  { %877 = vrot.lane.b32.xlu0 %v863_v25, %s1673_s20  ;;  %837 = vrot.lane.b32.xlu1 %v827_v26, %s1673_s20  ;;  %v176_v25 = vsel %vm175_vm0, %v1968_v6, %v1976_v9  ;;  %v147_v26 = vmul.f32 %v1774_v20, %v1790_v28  ;;  %v148_v6 = vmul.f32 %v1774_v20, %v1808_v38 }
 0x1a5   :  { %v149_v28 = vmul.f32 %v1774_v20, %v1822_v45  ;;  %v927_v38 = vmul.f32 %v2012_v46, %v2037_v48  ;;  %v177_v45 = vsel %vm175_vm0, %v1976_v9, %v2014_v47  ;;  %v929_v9 = vmul.f32 %v2012_v46, %v2061_v5 }
 0x1a6   :  { %v2265_v43 = vpop.permute.xlu0 %448  ;;  %v2267_v8 = vpop.permute.xlu1 %476  ;;  %v184_v3 = vadd.f32 %v176_v25, %v147_v26 }
 0x1a7   :  { %2901 = vst [vmem:[#allocation31_spill] sm:$0xff] %v2265_v43  ;;  %2902 = vst [vmem:[#allocation32_spill] sm:$0xff] %v2267_v8  ;;  %v830_v8 = vmul.f32 %v1951_v0, %v2121_v4 }
 0x1a8   :  { %839 = vrot.lane.b32.xlu0 %v828_v18, %s1673_s20  ;;  %841 = vrot.lane.b32.xlu1 %v829_v34, %s1673_s20  ;;  %v831_v18 = vmul.f32 %v1951_v0, %v2123_v36  ;;  %v213_v34 = vsel %vm212_vm1, %v2069_v11, %v2091_v54  ;;  %v250_v0 = vsel %vm249_vm2, %v2111_v13, %v2127_v37 }
 0x1a9   :  { %v382_v11 = vmul.f32 %v1895_v31, %v1877_v15  ;;  %v179_v15 = vsel %vm175_vm0, %v2045_v60, %v2047_v62  ;;  %v214_v13 = vsel %vm212_vm1, %v2091_v54, %v2067_v10  ;;  %v215_v62 = vsel %vm212_vm1, %v2067_v10, %v2113_v2 }
 0x1aa   :  { %v2280_v43 = vpop.permute.xlu0 %478  ;;  %v2282_v12 = vpop.permute.xlu1 %480  ;;  %v931_v54 = vmul.f32 %v2012_v46, %v2083_v49  ;;  %v251_v10 = vsel %vm249_vm2, %v2127_v37, %v2125_v7  ;;  %v288_v37 = vsel %vm286_vm3, %v2147_v57, %v2155_v56 }
 0x1ab   :  { %2903 = vst [vmem:[#allocation33_spill] sm:$0xff] %v2282_v12  ;;  %v150_v12 = vmul.f32 %v1774_v20, %v1788_v27  ;;  %v928_v20 = vmul.f32 %v2012_v46, %v2035_v59  ;;  %v178_v27 = vsel %vm175_vm0, %v2014_v47, %v2045_v60  ;;  %v930_v47 = vmul.f32 %v2012_v46, %v2053_v1 }
 0x1ac   :  { %843 = vrot.lane.b32.xlu0 %v830_v8, %s1673_s20  ;;  %845 = vrot.lane.b32.xlu1 %v831_v18, %s1673_s20  ;;  %v221_v8 = vadd.f32 %v213_v34, %v184_v3  ;;  %v287_v3 = vsel %vm286_vm3, %v2145_v41, %v2147_v57  ;;  %v185_v60 = vadd.f32 %v177_v45, %v148_v6 }
 0x1ad   :  { %v324_v41 = vsel %vm323_vm4, %v2175_v35, %v2167_v17  ;;  %v186_v34 = vadd.f32 %v178_v27, %v149_v28  ;;  %v252_v35 = vsel %vm249_vm2, %v2125_v7, %v2137_v29  ;;  %v289_v7 = vsel %vm286_vm3, %v2155_v56, %v2157_v32 }
 0x1ae   :  { %v2309_v25 = vpop.permute.xlu0 %482  ;;  %v2311_v26 = vpop.permute.xlu1 %484  ;;  %v258_v18 = vadd.f32 %v250_v0, %v221_v8  ;;  %v187_v0 = vadd.f32 %v179_v15, %v150_v12  ;;  %v222_v45 = vadd.f32 %v214_v13, %v185_v60  ;;  %v361_v12 = vsel %vm360_vm5, %v2205_v42, %v2187_v63 }
 0x1af   :  { %v223_v28 = vadd.f32 %v215_v62, %v186_v34  ;;  %v895_v42 = vmul.f32 %v2012_v46, %v2075_v24  ;;  %v325_v57 = vsel %vm323_vm4, %v2167_v17, %v2185_v58  ;;  %v326_v56 = vsel %vm323_vm4, %v2185_v58, %v2177_v51 }
 0x1b0   :  { %937 = vrot.lane.b32.xlu0 %v927_v38, %s1674_s21  ;;  %939 = vrot.lane.b32.xlu1 %v928_v20, %s1674_s21  ;;  %v216_v38 = vsel %vm212_vm1, %v2113_v2, %v2089_v52  ;;  %v295_v8 = vadd.f32 %v287_v3, %v258_v18  ;;  %v253_v52 = vsel %vm249_vm2, %v2137_v29, %v2135_v19 }
 0x1b1   :  { %v224_v27 = vadd.f32 %v216_v38, %v187_v0  ;;  %v259_v15 = vadd.f32 %v251_v10, %v222_v45  ;;  %v260_v3 = vadd.f32 %v252_v35, %v223_v28  ;;  %v290_v19 = vsel %vm286_vm3, %v2157_v32, %v2165_v16 }
 0x1b2   :  { %v2344_v20 = vpop.permute.xlu0 %512  ;;  %v2346_v6 = vpop.permute.xlu1 %514  ;;  %v332_v2 = vadd.f32 %v324_v41, %v295_v8  ;;  %v327_v32 = vsel %vm323_vm4, %v2177_v51, %v2195_v53  ;;  %v362_v17 = vsel %vm360_vm5, %v2187_v63, %v2215_v50  ;;  %v363_v58 = vsel %vm360_vm5, %v2215_v50, %v2197_v14 }
 0x1b3   :  { %v261_v18 = vadd.f32 %v253_v52, %v224_v27  ;;  %v296_v60 = vadd.f32 %v288_v37, %v259_v15  ;;  %v297_v62 = vadd.f32 %v289_v7, %v260_v3  ;;  %v897_v41 = vmul.f32 %v2012_v46, %v2105_v33  ;;  %v2907_v37 = vld [vmem:[#allocation32_spill] sm:$0xff] }
 0x1b4   :  { %941 = vrot.lane.b32.xlu0 %v929_v9, %s1674_s21  ;;  %943 = vrot.lane.b32.xlu1 %v930_v47, %s1674_s21  ;;  %v369_v29 = vadd.f32 %v361_v12, %v332_v2  ;;  %v896_v47 = vmul.f32 %v2012_v46, %v2097_v55  ;;  %v364_v53 = vsel %vm360_vm5, %v2197_v14, %v2225_v40  ;;  %v2904_v2 = vld [vmem:[#allocation15_spill] sm:$0xff] }
 0x1b5   :  { %v298_v16 = vadd.f32 %v290_v19, %v261_v18  ;;  %v333_v34 = vadd.f32 %v325_v57, %v296_v60  ;;  %v334_v0 = vadd.f32 %v326_v56, %v297_v62  ;;  %v414_v63 = vsel %vm175_vm0, %v2207_v44, %v2217_v22  ;;  %v2909_v18 = vld [vmem:[#allocation30_spill] sm:$0xff]  ;;  %v2910_v62 = vld [vmem:[#allocation28_spill] sm:$0xff] }
 0x1b6   :  { %v2373_v9 = vpop.permute.xlu0 %516  ;;  %v2375_v13 = vpop.permute.xlu1 %518  ;;  %v386_v38 = vadd.f32 %v382_v11, %v369_v29  ;;  %v383_v10 = vmul.f32 %v1895_v31, %v1885_v23  ;;  %v384_v40 = vmul.f32 %v1895_v31, %v1903_v39  ;;  %v385_v14 = vmul.f32 %v1895_v31, %v1893_v30  ;;  %v2905_v39 = vld [vmem:[#allocation27_spill] sm:$0xff]  ;;  %v2906_v31 = vld [vmem:[#allocation26_spill] sm:$0xff] }
 0x1b7   :  { %v335_v8 = vadd.f32 %v327_v32, %v298_v16  ;;  %v370_v45 = vadd.f32 %v362_v17, %v333_v34  ;;  %v371_v50 = vadd.f32 %v363_v58, %v334_v0  ;;  %v450_v44 = vsel %vm212_vm1, %v2245_v21, %v2247_v61 }
 0x1b8   :  { %945 = vrot.lane.b32.xlu0 %v931_v54, %s1674_s21  ;;  %905 = vrot.lane.b32.xlu1 %v895_v42, %s1674_s21  ;;  %v422_v35 = vadd.f32 %v414_v63, %v386_v38  ;;  %v898_v23 = vmul.f32 %v2012_v46, %v2121_v4  ;;  %v899_v52 = vmul.f32 %v2012_v46, %v2123_v36 }
 0x1b9   :  { %v372_v11 = vadd.f32 %v364_v53, %v335_v8  ;;  %v995_v27 = vmul.f32 %v2904_v2, %v2037_v48  ;;  %v415_v30 = vsel %vm175_vm0, %v2217_v22, %v2905_v39  ;;  %v416_v21 = vsel %vm175_vm0, %v2905_v39, %v2906_v31  ;;  %v2908_v22 = vld [vmem:[#allocation29_spill] sm:$0xff] }
 0x1ba   :  { %v2401_v51 = vpop.permute.xlu0 %520  ;;  %v549_v54 = vpop.permute.xlu1 %548  ;;  %v486_v7 = vsel %vm249_vm2, %v2907_v37, %v2280_v43  ;;  %v996_v42 = vmul.f32 %v2904_v2, %v2035_v59  ;;  %v387_v15 = vadd.f32 %v383_v10, %v370_v45  ;;  %v388_v46 = vadd.f32 %v384_v40, %v371_v50  ;;  %v2912_v50 = vld [vmem:[#allocation31_spill] sm:$0xff] }
 0x1bb   :  { %v458_v3 = vadd.f32 %v450_v44, %v422_v35  ;;  %v389_v19 = vadd.f32 %v385_v14, %v372_v11  ;;  %v451_v29 = vsel %vm212_vm1, %v2247_v61, %v2908_v22  ;;  %v452_v57 = vsel %vm212_vm1, %v2908_v22, %v2909_v18 }
 0x1bc   :  { %907 = vrot.lane.b32.xlu0 %v896_v47, %s1674_s21  ;;  %909 = vrot.lane.b32.xlu1 %v897_v41, %s1674_s21  ;;  %v522_v56 = vsel %vm286_vm3, %v2344_v20, %v2346_v6  ;;  %v423_v47 = vadd.f32 %v415_v30, %v387_v15  ;;  %v424_v60 = vadd.f32 %v416_v21, %v388_v46  ;;  %v2911_v41 = vld [vmem:[#allocation33_spill] sm:$0xff] }
 0x1bd   :  { %v417_v32 = vsel %vm175_vm0, %v2906_v31, %v2910_v62  ;;  %v494_v16 = vadd.f32 %v486_v7, %v458_v3  ;;  %v487_v61 = vsel %vm249_vm2, %v2280_v43, %v2911_v41  ;;  %v488_v34 = vsel %vm249_vm2, %v2911_v41, %v2309_v25 }
 0x1be   :  { %v551_v12 = vpop.permute.xlu0 %550  ;;  %v553_v28 = vpop.permute.xlu1 %552  ;;  %v997_v20 = vmul.f32 %v2904_v2, %v2061_v5  ;;  %v459_v38 = vadd.f32 %v451_v29, %v423_v47  ;;  %v460_v53 = vadd.f32 %v452_v57, %v424_v60  ;;  %v425_v63 = vadd.f32 %v417_v32, %v389_v19 }
 0x1bf   :  { %v558_v0 = vsel %vm323_vm4, %v549_v54, %v551_v12  ;;  %v530_v8 = vadd.f32 %v522_v56, %v494_v16  ;;  %v523_v43 = vsel %vm286_vm3, %v2346_v6, %v2373_v9  ;;  %v524_v45 = vsel %vm286_vm3, %v2373_v9, %v2375_v13 }
 0x1c0   :  { %911 = vrot.lane.b32.xlu0 %v898_v23, %s1674_s21  ;;  %913 = vrot.lane.b32.xlu1 %v899_v52, %s1674_s21  ;;  %v998_v54 = vmul.f32 %v2904_v2, %v2053_v1  ;;  %v453_v10 = vsel %vm212_vm1, %v2909_v18, %v2912_v50  ;;  %v495_v11 = vadd.f32 %v487_v61, %v459_v38 }
 0x1c1   :  { %v496_v40 = vadd.f32 %v488_v34, %v460_v53  ;;  %v566_v14 = vadd.f32 %v558_v0, %v530_v8  ;;  %v489_v6 = vsel %vm249_vm2, %v2309_v25, %v2311_v26  ;;  %v559_v23 = vsel %vm323_vm4, %v551_v12, %v553_v28 }
 0x1c2   :  { %v555_v17 = vpop.permute.xlu0 %554  ;;  %v557_v58 = vpop.permute.xlu1 %556  ;;  %v461_v31 = vadd.f32 %v453_v10, %v425_v63  ;;  %v999_v21 = vmul.f32 %v2904_v2, %v2083_v49  ;;  %v963_v25 = vmul.f32 %v2904_v2, %v2075_v24  ;;  %v525_v26 = vsel %vm286_vm3, %v2375_v13, %v2401_v51 }
 0x1c3   :  { %v560_v9 = vsel %vm323_vm4, %v553_v28, %v555_v17  ;;  %v532_v39 = vadd.f32 %v524_v45, %v496_v40  ;;  %v561_v19 = vsel %vm323_vm4, %v555_v17, %v557_v58  ;;  %v964_v51 = vmul.f32 %v2904_v2, %v2097_v55 }
 0x1c4   :  { %1005 = vrot.lane.b32.xlu0 %v995_v27, %s1675_s22  ;;  %1007 = vrot.lane.b32.xlu1 %v996_v42, %s1675_s22  ;;  %v531_v27 = vadd.f32 %v523_v43, %v495_v11  ;;  %v497_v15 = vadd.f32 %v489_v6, %v461_v31  ;;  %v965_v60 = vmul.f32 %v2904_v2, %v2105_v33 }
 0x1c5   :  { %v568_v28 = vadd.f32 %v560_v9, %v532_v39  ;;  %v966_v34 = vmul.f32 %v2904_v2, %v2121_v4  ;;  %v967_v8 = vmul.f32 %v2904_v2, %v2123_v36  ;;  %v2913_v39 = vld [vmem:[#allocation18_spill] sm:$0xff] }
 0x1c6   :  { %v585_v44 = vpop.permute.xlu0 %584  ;;  %v587_v35 = vpop.permute.xlu1 %586  ;;  %v567_v12 = vadd.f32 %v559_v23, %v531_v27  ;;  %v533_v13 = vadd.f32 %v525_v26, %v497_v15 }
 0x1c7   :  { %v594_v52 = vsel %vm360_vm5, %v585_v44, %v587_v35 }
 0x1c8   :  { %v602_v30 = vadd.f32 %v594_v52, %v566_v14  ;;  %1009 = vrot.lane.b32.xlu0 %v997_v20, %s1675_s22  ;;  %1011 = vrot.lane.b32.xlu1 %v998_v54, %s1675_s22  ;;  %v569_v62 = vadd.f32 %v561_v19, %v533_v13 }
 0x1ca   :  { %v1101_v37 = vmul.f32 0.63661975, %v602_v30  ;;  %v589_v7 = vpop.permute.xlu0 %588  ;;  %v591_v42 = vpop.permute.xlu1 %590 }
 0x1cb   :  { %v595_v46 = vsel %vm360_vm5, %v587_v35, %v589_v7  ;;  %v596_v3 = vsel %vm360_vm5, %v589_v7, %v591_v42 }
 0x1cc   :  { %v1105_v49 = vadd.f32 0.5, %v1101_v37  ;;  %v603_v22 = vadd.f32 %v595_v46, %v567_v12  ;;  %v604_v29 = vadd.f32 %v596_v3, %v568_v28  ;;  %1013 = vrot.lane.b32.xlu0 %v999_v21, %s1675_s22  ;;  %973 = vrot.lane.b32.xlu1 %v963_v25, %s1675_s22 }
 0x1ce   :  { %v1109_v18 = vfloor.f32 %v1105_v49  ;;  %v1102_v57 = vmul.f32 0.63661975, %v603_v22  ;;  %v1103_v56 = vmul.f32 0.63661975, %v604_v29  ;;  %v593_v47 = vpop.permute.xlu0 %592  ;;  %v2915_v49 = vld [vmem:[#allocation22_spill] sm:$0xff] }
 0x1cf   :  { %v597_v32 = vsel %vm360_vm5, %v591_v42, %v593_v47 }
 0x1d0   :  { %v1113_v16 = vmul.f32 1.5707964, %v1109_v18  ;;  %v1456_v17 = vtrunc.f32 %v1109_v18  ;;  %v1106_v58 = vadd.f32 0.5, %v1102_v57  ;;  %975 = vrot.lane.b32.xlu0 %v964_v51, %s1675_s22  ;;  %977 = vrot.lane.b32.xlu1 %v965_v60, %s1675_s22  ;;  %v1107_v41 = vadd.f32 0.5, %v1103_v56 }
 0x1d1   :  { %v2497_v61 = vadd.f32 %v597_v32, %v569_v62  ;;  %v1121_v20 = vmul.f32 4.371139e-08, %v1109_v18 }
 0x1d2   :  { %v1117_v0 = vsub.f32 %v602_v30, %v1113_v16  ;;  %v1110_v38 = vfloor.f32 %v1106_v58  ;;  %v666_v53 = vpop.permute.xlu0 %665  ;;  %v1111_v63 = vfloor.f32 %v1107_v41  ;;  %v1457_v54 = vcvt.f32.s32 %v1456_v17  ;;  %v2914_v30 = vld [vmem:[#allocation16_spill] sm:$0xff] }
 0x1d3   :  { %v1104_v43 = vmul.f32 0.63661975, %v2497_v61 }
 0x1d4   :  { %v2504_v45 = vadd.f32 %v1121_v20, %v1117_v0  ;;  %v1114_v50 = vmul.f32 1.5707964, %v1110_v38  ;;  %979 = vrot.lane.b32.xlu0 %v966_v34, %s1675_s22  ;;  %981 = vrot.lane.b32.xlu1 %v967_v8, %s1675_s22  ;;  %v1458_v10 = vtrunc.f32 %v1110_v38  ;;  %v1115_v11 = vmul.f32 1.5707964, %v1111_v63 }
 0x1d5   :  { %v1460_v40 = vtrunc.f32 %v1111_v63  ;;  %v1122_v35 = vmul.f32 4.371139e-08, %v1110_v38  ;;  %v1108_v36 = vadd.f32 0.5, %v1104_v43  ;;  %v1123_v23 = vmul.f32 4.371139e-08, %v1111_v63  ;;  %v2917_v38 = vld [vmem:[#allocation24_spill] sm:$0xff] }
 0x1d6   :  { %v1137_v14 = vmul.f32 %v2504_v45, %v2504_v45  ;;  %v1118_v44 = vsub.f32 %v603_v22, %v1114_v50  ;;  %v670_v2 = vpop.permute.xlu0 %669  ;;  %v1119_v6 = vsub.f32 %v604_v29, %v1115_v11  ;;  %v2510_v9 = vand.u32 3, %v1457_v54  ;;  %v2916_v22 = vld [vmem:[#allocation20_spill] sm:$0xff] }
 0x1d7   :  { %v1112_v27 = vfloor.f32 %v1108_v36  ;;  %v1459_v21 = vcvt.f32.s32 %v1458_v10  ;;  %v1461_v26 = vcvt.f32.s32 %v1460_v40 }
 0x1d8   :  { %v2512_v52 = vadd.f32 %v1122_v35, %v1118_v44  ;;  %1036 = vrot.lane.b32.xlu0 %v2913_v39, %s1672_s19  ;;  %1038 = vrot.lane.b32.xlu1 %v2914_v30, %s1672_s19  ;;  %v1141_v31 = vmul.f32 -0.00019515296, %v1137_v14  ;;  %v2518_v25 = vadd.f32 %v1123_v23, %v1119_v6  ;;  %v1169_v12 = vmul.f32 2.4433157e-05, %v1137_v14  ;;  %v2919_v39 = vld [vmem:[#allocation17_spill] sm:$0xff] }
 0x1d9   :  { %v1116_v37 = vmul.f32 1.5707964, %v1112_v27  ;;  %v1462_v19 = vtrunc.f32 %v1112_v27  ;;  %v1205_v29 = vand.u32 1, %v2510_v9  ;;  %v1157_v13 = vmul.f32 %v1137_v14, %v2504_v45 }
 0x1da   :  { %v2522_v28 = vmul.f32 %v2512_v52, %v2512_v52  ;;  %v674_v7 = vpop.permute.xlu0 %673  ;;  %v2526_v42 = vmul.f32 %v2518_v25, %v2518_v25  ;;  %v1145_v46 = vadd.f32 0.008332161, %v1141_v31  ;;  %v1452_v3 = vadd.f32 -0.0013887316, %v1169_v12 }
 0x1db   :  { %v2528_v15 = vpop.permute.xlu1 %608  ;;  %v2536_v51 = vand.u32 3, %v1459_v21  ;;  %v2538_v18 = vand.u32 3, %v1461_v26  ;;  %v1124_v57 = vmul.f32 4.371139e-08, %v1112_v27  ;;  %v1120_v47 = vsub.f32 %v2497_v61, %v1116_v37 }
 0x1dc   :  { %1040 = vrot.lane.b32.xlu0 %v2915_v49, %s1672_s19  ;;  %1042 = vrot.lane.b32.xlu1 %v2916_v22, %s1672_s19  ;;  %v2542_v56 = vmul.f32 %v2522_v28, %v2512_v52  ;;  %v616_v62 = vmul.f32 %v2528_v15, %v2035_v59  ;;  %v1185_v32 = vmul.f32 %v1137_v14, %v1137_v14  ;;  %v2555_v0 = vcvt.f32.s32 %v1462_v19  ;;  %v2918_v59 = vld [vmem:[#allocation19_spill] sm:$0xff]  ;;  %v2923_v22 = vld [vmem:[#allocation21_spill] sm:$0xff] }
 0x1dd   :  { %v2551_v16 = vmul.f32 %v2526_v42, %v2518_v25  ;;  %v615_v58 = vmul.f32 %v2528_v15, %v2037_v48  ;;  %v1149_v41 = vmul.f32 %v1145_v46, %v1137_v14  ;;  %v1177_v34 = vmul.f32 %v1452_v3, %v1137_v14 }
 0x1de   :  { %v2545_v60 = vpop.permute.xlu0 %635  ;;  %v617_v8 = vmul.f32 %v2528_v15, %v2061_v5  ;;  %vm1233_vm6 = vcmp.eq.s32.totalorder %v2510_v9, 1  ;;  %v618_v10 = vmul.f32 %v2528_v15, %v2053_v1  ;;  %v1142_v11 = vmul.f32 -0.00019515296, %v2522_v28  ;;  %v2920_v1 = vld [vmem:[#allocation23_spill] sm:$0xff] }
 0x1df   :  { %v668_v17 = vpop.permute.xlu1 %667  ;;  %v1448_v43 = vadd.f32 -0.16666655, %v1149_v41  ;;  %v1181_v54 = vadd.f32 0.041666646, %v1177_v34  ;;  %v1170_v40 = vmul.f32 2.4433157e-05, %v2522_v28  ;;  %v611_v44 = vmul.f32 %v2528_v15, %v2075_v24 }
 0x1e0   :  { %v675_v61 = vsel %vm175_vm0, %v666_v53, %v668_v17  ;;  %v676_v20 = vsel %vm175_vm0, %v668_v17, %v670_v2  ;;  %1044 = vrot.lane.b32.xlu0 %v2917_v38, %s1672_s19  ;;  %1063 = vrot.lane.b32.xlu1 %v2918_v59, %s1672_s19  ;;  %v2570_v53 = vadd.f32 %v1124_v57, %v1120_v47  ;;  %v1193_v6 = vmul.f32 0.5, %v1137_v14 }
 0x1e1   :  { %v2566_v48 = vadd.f32 %v675_v61, %v615_v58  ;;  %v2568_v63 = vadd.f32 %v676_v20, %v616_v62  ;;  %v1161_v35 = vmul.f32 %v1448_v43, %v1157_v13  ;;  %v1189_v36 = vmul.f32 %v1185_v32, %v1181_v54 }
 0x1e2   :  { %v2572_v50 = vpop.permute.xlu0 %639  ;;  %v1146_v30 = vadd.f32 0.008332161, %v1142_v11  ;;  %v1453_v31 = vadd.f32 -0.0013887316, %v1170_v40  ;;  %v612_v24 = vmul.f32 %v2528_v15, %v2097_v55  ;;  %vm2596_vm7 = vcmp.eq.s32.totalorder %v1205_v29, 1  ;;  %v2924_v29 = vld [vmem:[#allocation25_spill] sm:$0xff] }
 0x1e3   :  { %v672_v5 = vpop.permute.xlu1 %671  ;;  %v1197_v14 = vsub.f32 %v1189_v36, %v1193_v6  ;;  %v2603_v19 = vadd.f32 %v1161_v35, %v2504_v45  ;;  %vm1237_vm8 = vcmp.eq.s32.totalorder %v2510_v9, 2  ;;  %v1143_v55 = vmul.f32 -0.00019515296, %v2526_v42 }
 0x1e4   :  { %v677_v23 = vsel %vm175_vm0, %v670_v2, %v672_v5  ;;  %v678_v27 = vsel %vm175_vm0, %v672_v5, %v674_v7  ;;  %1065 = vrot.lane.b32.xlu0 %v2919_v39, %s1672_s19  ;;  %1067 = vrot.lane.b32.xlu1 %v2920_v1, %s1672_s19  ;;  %v613_v2 = vmul.f32 %v2528_v15, %v2105_v33  ;;  %v1171_v17 = vmul.f32 2.4433157e-05, %v2526_v42  ;;  %vm1241_vm9 = vmor %vm1233_vm6, %vm1237_vm8 }
 0x1e5   :  { %v2586_v21 = vadd.f32 %v677_v23, %v617_v8  ;;  %v2588_v26 = vadd.f32 %v678_v27, %v618_v10  ;;  %v1150_v7 = vmul.f32 %v1146_v30, %v2522_v28  ;;  %v1178_v46 = vmul.f32 %v1453_v31, %v2522_v28 }
 0x1e6   :  { %v2592_v12 = vpop.permute.xlu0 %733  ;;  %v2605_v49 = vadd.f32 1.0, %v1197_v14  ;;  %v1186_v45 = vmul.f32 %v2522_v28, %v2522_v28  ;;  %v1147_v32 = vadd.f32 0.008332161, %v1143_v55  ;;  %v2626_v58 = vmul.f32 %v2570_v53, %v2570_v53 }
 0x1e7   :  { %v634_v3 = vpop.permute.xlu1 %633  ;;  %v1449_v13 = vadd.f32 -0.16666655, %v1150_v7  ;;  %v1182_v57 = vadd.f32 0.041666646, %v1178_v46  ;;  %v1194_v20 = vmul.f32 0.5, %v2522_v28  ;;  %v1206_v8 = vand.u32 1, %v2536_v51 }
 0x1e8   :  { %v643_v33 = vsel %vm175_vm0, %v634_v3, %v2545_v60  ;;  %1069 = vrot.lane.b32.xlu0 %v2923_v22, %s1672_s19  ;;  %1071 = vrot.lane.b32.xlu1 %v2924_v29, %s1672_s19  ;;  %v1217_v62 = vsel %vm2596_vm7, %v2603_v19, %v2605_v49  ;;  %v1151_v43 = vmul.f32 %v1147_v32, %v2526_v42  ;;  %v1454_v54 = vadd.f32 -0.0013887316, %v1171_v17 }
 0x1e9   :  { %v2617_v47 = vadd.f32 %v643_v33, %v611_v44  ;;  %v1245_v34 = vsub.f32 0.0, %v1217_v62  ;;  %v1190_v61 = vmul.f32 %v1186_v45, %v1182_v57  ;;  %v1162_v59 = vmul.f32 %v1449_v13, %v2542_v56 }
 0x1ea   :  { %v2628_v41 = vpop.permute.xlu0 %737  ;;  %vm1234_vm10 = vcmp.eq.s32.totalorder %v2536_v51, 1  ;;  %v1450_v44 = vadd.f32 -0.16666655, %v1151_v43  ;;  %vm1238_vm11 = vcmp.eq.s32.totalorder %v2536_v51, 2  ;;  %v1179_v36 = vmul.f32 %v1454_v54, %v2526_v42 }
 0x1eb   :  { %v638_v38 = vpop.permute.xlu1 %637  ;;  %v1249_v28 = vsel %vm1241_vm9, %v1245_v34, %v1217_v62  ;;  %v1198_v56 = vsub.f32 %v1190_v61, %v1194_v20  ;;  %v1207_v6 = vand.u32 1, %v2538_v18  ;;  %v2654_v23 = vadd.f32 %v1162_v59, %v2512_v52  ;;  %vm1242_vm13 = vmor %vm1234_vm10, %vm1238_vm11 }
 0x1ec   :  { %v644_v10 = vsel %vm175_vm0, %v2545_v60, %v638_v38  ;;  %v645_v11 = vsel %vm175_vm0, %v638_v38, %v2572_v50  ;;  %1257 = vrot.lane.b32.xlu0 %v1249_v28, %s1676_s23  ;;  %v614_v60 = vmul.f32 %v2528_v15, %v2121_v4  ;;  %v1144_v1 = vmul.f32 -0.00019515296, %v2626_v58 }
 0x1ed   :  { %v2643_v40 = vadd.f32 %v644_v10, %v612_v24  ;;  %v2645_v5 = vadd.f32 %v645_v11, %v613_v2  ;;  %v2656_v27 = vadd.f32 1.0, %v1198_v56  ;;  %v1172_v30 = vmul.f32 2.4433157e-05, %v2626_v58 }
 0x1ee   :  { %v742_v35 = vpop.permute.xlu0 %741  ;;  %vm2660_vm12 = vcmp.eq.s32.totalorder %v1206_v8, 1  ;;  %v1183_v15 = vadd.f32 0.041666646, %v1179_v36  ;;  %v1187_v24 = vmul.f32 %v2526_v42, %v2526_v42  ;;  %v1163_v2 = vmul.f32 %v1450_v44, %v2551_v16 }
 0x1ef   :  { %v642_v39 = vpop.permute.xlu1 %641  ;;  %v1218_v52 = vsel %vm2660_vm12, %v2654_v23, %v2656_v27  ;;  %v1148_v7 = vadd.f32 0.008332161, %v1144_v1  ;;  %v1195_v55 = vmul.f32 0.5, %v2526_v42  ;;  %v2677_v22 = vand.u32 3, %v2555_v0 }
 0x1f0   :  { %v646_v4 = vsel %vm175_vm0, %v2572_v50, %v642_v39  ;;  %v1246_v46 = vsub.f32 0.0, %v1218_v52  ;;  %v1191_v3 = vmul.f32 %v1187_v24, %v1183_v15  ;;  %v1455_v50 = vadd.f32 -0.0013887316, %v1172_v30 }
 0x1f1   :  { %v2672_v14 = vadd.f32 %v646_v4, %v614_v60  ;;  %v1160_v29 = vmul.f32 %v2626_v58, %v2570_v53  ;;  %vm2685_vm14 = vcmp.eq.s32.totalorder %v1207_v6, 1  ;;  %v1152_v13 = vmul.f32 %v1148_v7, %v2626_v58 }
 0x1f2   :  { %v704_v33 = vpop.permute.xlu0 %703  ;;  %v1250_v57 = vsel %vm1242_vm13, %v1246_v46, %v1218_v52  ;;  %v1199_v45 = vsub.f32 %v1191_v3, %v1195_v55  ;;  %v1180_v0 = vmul.f32 %v1455_v50, %v2626_v58  ;;  %v1188_v62 = vmul.f32 %v2626_v58, %v2626_v58 }
 0x1f3   :  { %v736_v42 = vpop.permute.xlu1 %735  ;;  %1259 = vrot.lane.b32.xlu1 %v1250_v57, %s1676_s23  ;;  %v1167_v32 = vadd.f32 %v1163_v2, %v2518_v25  ;;  %v1451_v17 = vadd.f32 -0.16666655, %v1152_v13  ;;  %vm1235_vm15 = vcmp.eq.s32.totalorder %v2538_v18, 1  ;;  %vm1239_vm0 = vcmp.eq.s32.totalorder %v2538_v18, 2 }
 0x1f4   :  { %v743_v34 = vsel %vm212_vm1, %v2592_v12, %v736_v42  ;;  %v744_v61 = vsel %vm212_vm1, %v736_v42, %v2628_v41  ;;  %v1203_v20 = vadd.f32 1.0, %v1199_v45  ;;  %v1184_v38 = vadd.f32 0.041666646, %v1180_v0  ;;  %vm1243_vm6 = vmor %vm1235_vm15, %vm1239_vm0 }
 0x1f5   :  { %v2700_v59 = vadd.f32 %v743_v34, %v2566_v48  ;;  %v2703_v8 = vadd.f32 %v744_v61, %v2568_v63  ;;  %v1196_v25 = vmul.f32 0.5, %v2626_v58  ;;  %v1213_v12 = vsel %vm2596_vm7, %v2605_v49, %v2603_v19 }
 0x1f6   :  { %v708_v43 = vpop.permute.xlu0 %707  ;;  %v1219_v48 = vsel %vm2685_vm14, %v1167_v32, %v1203_v20  ;;  %v1164_v10 = vmul.f32 %v1451_v17, %v1160_v29  ;;  %v1192_v11 = vmul.f32 %v1188_v62, %v1184_v38  ;;  %v1208_v56 = vand.u32 1, %v2677_v22 }
 0x1f7   :  { %v740_v54 = vpop.permute.xlu1 %739  ;;  %v1247_v28 = vsub.f32 0.0, %v1219_v48  ;;  %v1225_v36 = vsub.f32 0.0, %v1213_v12  ;;  %v1215_v1 = vsel %vm2685_vm14, %v1203_v20, %v1167_v32  ;;  %vm1236_vm8 = vcmp.eq.s32.totalorder %v2677_v22, 1 }
 0x1f8   :  { %v745_v63 = vsel %vm212_vm1, %v2628_v41, %v740_v54  ;;  %v746_v44 = vsel %vm212_vm1, %v740_v54, %v742_v35  ;;  %v1200_v58 = vsub.f32 %v1192_v11, %v1196_v25  ;;  %v1168_v39 = vadd.f32 %v1164_v10, %v2570_v53 }
 0x1f9   :  { %v753_v60 = vadd.f32 %v745_v63, %v2586_v21  ;;  %v754_v37 = vadd.f32 %v746_v44, %v2588_v26  ;;  %v1251_v49 = vsel %vm1243_vm6, %v1247_v28, %v1219_v48  ;;  %vm2725_vm7 = vcmp.eq.s32.totalorder %v1208_v56, 1 }
 0x1fa   :  { %v802_v19 = vpop.permute.xlu0 %801  ;;  %1261 = vrot.lane.b32.xlu0 %v1251_v49, %s1676_s23  ;;  %v1204_v41 = vadd.f32 1.0, %v1200_v58  ;;  %vm1240_vm9 = vcmp.eq.s32.totalorder %v2677_v22, 2  ;;  %vm1221_vm10 = vcmp.ge.s32.totalorder %v2510_v9, 2  ;;  %v1214_v53 = vsel %vm2660_vm12, %v2656_v27, %v2654_v23 }
 0x1fb   :  { %v702_v6 = vpop.permute.xlu1 %701  ;;  %v1229_v24 = vsel %vm1221_vm10, %v1225_v36, %v1213_v12  ;;  %v1227_v52 = vsub.f32 0.0, %v1215_v1  ;;  %vm1244_vm11 = vmor %vm1236_vm8, %vm1240_vm9  ;;  %v1226_v3 = vsub.f32 0.0, %v1214_v53  ;;  %vm1223_vm12 = vcmp.ge.s32.totalorder %v2538_v18, 2 }
 0x1fc   :  { %v711_v35 = vsel %vm212_vm1, %v702_v6, %v704_v33  ;;  %v1220_v26 = vsel %vm2725_vm7, %v1168_v39, %v1204_v41  ;;  %v1216_v23 = vsel %vm2725_vm7, %v1204_v41, %v1168_v39  ;;  %vm1222_vm13 = vcmp.ge.s32.totalorder %v2536_v51, 2 }
 0x1fd   :  { %v719_v21 = vadd.f32 %v711_v35, %v2617_v47  ;;  %v1248_v15 = vsub.f32 0.0, %v1220_v26  ;;  %v1231_v31 = vsel %vm1223_vm12, %v1227_v52, %v1215_v1  ;;  %v1230_v29 = vsel %vm1222_vm13, %v1226_v3, %v1214_v53 }
 0x1fe   :  { %v806_v4 = vpop.permute.xlu0 %805  ;;  %1283 = vrot.lane.b32.xlu0 %v1229_v24, %s1676_s23  ;;  %vm1224_vm14 = vcmp.ge.s32.totalorder %v2677_v22, 2 }
 0x1ff   :  { %v706_v2 = vpop.permute.xlu1 %705  ;;  %v1252_v46 = vsel %vm1244_vm11, %v1248_v15, %v1220_v26 }
 0x200   :  { %v712_v47 = vsel %vm212_vm1, %v704_v33, %v706_v2  ;;  %v713_v7 = vsel %vm212_vm1, %v706_v2, %v708_v43  ;;  %1263 = vrot.lane.b32.xlu1 %v1252_v46, %s1676_s23 }
 0x201   :  { %v720_v9 = vadd.f32 %v712_v47, %v2643_v40  ;;  %v721_v55 = vadd.f32 %v713_v7, %v2645_v5  ;;  %v1228_v40 = vsub.f32 0.0, %v1216_v23 }
 0x202   :  { %v810_v27 = vpop.permute.xlu0 %809  ;;  %1287 = vrot.lane.b32.xlu0 %v1231_v31, %s1676_s23 }
 0x203   :  { %v710_v50 = vpop.permute.xlu1 %709  ;;  %v1232_v57 = vsel %vm1224_vm14, %v1228_v40, %v1216_v23 }
 0x204   :  { %v714_v33 = vsel %vm212_vm1, %v708_v43, %v710_v50  ;;  %1285 = vrot.lane.b32.xlu1 %v1230_v29, %s1676_s23  ;;  %vm1265_vm1 = vcmask 23552  }
 0x205   :  { %v722_v5 = vadd.f32 %v714_v33, %v2672_v14 }
 0x206   :  { %v772_v16 = vpop.permute.xlu0 %771 }
 0x207   :  { %v804_v18 = vpop.permute.xlu1 %803 }
 0x208   :  { %v811_v13 = vsel %vm249_vm2, %v802_v19, %v804_v18  ;;  %v812_v42 = vsel %vm249_vm2, %v804_v18, %v806_v4  ;;  %1289 = vrot.lane.b32.xlu1 %v1232_v57, %s1676_s23 }
 0x209   :  { %v819_v51 = vadd.f32 %v811_v13, %v2700_v59  ;;  %v820_v45 = vadd.f32 %v812_v42, %v2703_v8 }
 0x20a   :  { %v776_v0 = vpop.permute.xlu0 %775 }
 0x20b   :  { %v808_v62 = vpop.permute.xlu1 %807 }
 0x20c   :  { %v813_v14 = vsel %vm249_vm2, %v806_v4, %v808_v62  ;;  %v814_v32 = vsel %vm249_vm2, %v808_v62, %v810_v27 }
 0x20d   :  { %v821_v17 = vadd.f32 %v813_v14, %v753_v60  ;;  %v822_v34 = vadd.f32 %v814_v32, %v754_v37 }
 0x20e   :  { %v870_v22 = vpop.permute.xlu0 %869 }
 0x20f   :  { %v770_v61 = vpop.permute.xlu1 %769 }
 0x210   :  { %v779_v20 = vsel %vm249_vm2, %v770_v61, %v772_v16 }
 0x211   :  { %v787_v38 = vadd.f32 %v779_v20, %v719_v21 }
 0x212   :  { %v874_v43 = vpop.permute.xlu0 %873 }
 0x213   :  { %v774_v25 = vpop.permute.xlu1 %773 }
 0x214   :  { %v780_v59 = vsel %vm249_vm2, %v772_v16, %v774_v25  ;;  %v781_v8 = vsel %vm249_vm2, %v774_v25, %v776_v0 }
 0x215   :  { %v788_v12 = vadd.f32 %v780_v59, %v720_v9  ;;  %v789_v54 = vadd.f32 %v781_v8, %v721_v55 }
 0x216   :  { %v878_v48 = vpop.permute.xlu0 %877 }
 0x217   :  { %v778_v10 = vpop.permute.xlu1 %777 }
 0x218   :  { %v782_v11 = vsel %vm249_vm2, %v776_v0, %v778_v10 }
 0x219   :  { %v790_v63 = vadd.f32 %v782_v11, %v722_v5 }
 0x21a   :  { %v840_v28 = vpop.permute.xlu0 %839 }
 0x21b   :  { %v872_v56 = vpop.permute.xlu1 %871 }
 0x21c   :  { %v879_v44 = vsel %vm286_vm3, %v870_v22, %v872_v56  ;;  %v880_v58 = vsel %vm286_vm3, %v872_v56, %v874_v43 }
 0x21d   :  { %v887_v60 = vadd.f32 %v879_v44, %v819_v51  ;;  %v888_v37 = vadd.f32 %v880_v58, %v820_v45 }
 0x21e   :  { %v844_v19 = vpop.permute.xlu0 %843 }
 0x21f   :  { %v876_v49 = vpop.permute.xlu1 %875 }
 0x220   :  { %v881_v36 = vsel %vm286_vm3, %v874_v43, %v876_v49  ;;  %v882_v6 = vsel %vm286_vm3, %v876_v49, %v878_v48 }
 0x221   :  { %v889_v39 = vadd.f32 %v881_v36, %v821_v17  ;;  %v890_v41 = vadd.f32 %v882_v6, %v822_v34 }
 0x222   :  { %v938_v1 = vpop.permute.xlu0 %937 }
 0x223   :  { %v838_v35 = vpop.permute.xlu1 %837 }
 0x224   :  { %v847_v16 = vsel %vm286_vm3, %v838_v35, %v840_v28 }
 0x225   :  { %v855_v14 = vadd.f32 %v847_v16, %v787_v38 }
 0x226   :  { %v942_v30 = vpop.permute.xlu0 %941 }
 0x227   :  { %v842_v21 = vpop.permute.xlu1 %841 }
 0x228   :  { %v848_v18 = vsel %vm286_vm3, %v840_v28, %v842_v21  ;;  %v849_v57 = vsel %vm286_vm3, %v842_v21, %v844_v19 }
 0x229   :  { %v856_v32 = vadd.f32 %v848_v18, %v788_v12  ;;  %v857_v25 = vadd.f32 %v849_v57, %v789_v54 }
 0x22a   :  { %v946_v26 = vpop.permute.xlu0 %945 }
 0x22b   :  { %v846_v53 = vpop.permute.xlu1 %845 }
 0x22c   :  { %v850_v51 = vsel %vm286_vm3, %v844_v19, %v846_v53 }
 0x22d   :  { %v858_v59 = vadd.f32 %v850_v51, %v790_v63 }
 0x22e   :  { %v908_v4 = vpop.permute.xlu0 %907 }
 0x22f   :  { %v940_v15 = vpop.permute.xlu1 %939 }
 0x230   :  { %v947_v13 = vsel %vm323_vm4, %v938_v1, %v940_v15  ;;  %v948_v42 = vsel %vm323_vm4, %v940_v15, %v942_v30 }
 0x231   :  { %v955_v17 = vadd.f32 %v947_v13, %v887_v60  ;;  %v956_v22 = vadd.f32 %v948_v42, %v888_v37 }
 0x232   :  { %v912_v24 = vpop.permute.xlu0 %911 }
 0x233   :  { %v944_v52 = vpop.permute.xlu1 %943 }
 0x234   :  { %v949_v61 = vsel %vm323_vm4, %v942_v30, %v944_v52  ;;  %v950_v20 = vsel %vm323_vm4, %v944_v52, %v946_v26 }
 0x235   :  { %v957_v56 = vadd.f32 %v949_v61, %v889_v39  ;;  %v958_v44 = vadd.f32 %v950_v20, %v890_v41 }
 0x236   :  { %v1006_v2 = vpop.permute.xlu0 %1005 }
 0x237   :  { %v906_v47 = vpop.permute.xlu1 %905 }
 0x238   :  { %v915_v43 = vsel %vm323_vm4, %v906_v47, %v908_v4 }
 0x239   :  { %v923_v58 = vadd.f32 %v915_v43, %v855_v14 }
 0x23a   :  { %v1010_v7 = vpop.permute.xlu0 %1009 }
 0x23b   :  { %v910_v46 = vpop.permute.xlu1 %909 }
 0x23c   :  { %v916_v8 = vsel %vm323_vm4, %v908_v4, %v910_v46  ;;  %v917_v10 = vsel %vm323_vm4, %v910_v46, %v912_v24 }
 0x23d   :  { %v924_v37 = vadd.f32 %v916_v8, %v856_v32  ;;  %v925_v36 = vadd.f32 %v917_v10, %v857_v25 }
 0x23e   :  { %v1014_v3 = vpop.permute.xlu0 %1013 }
 0x23f   :  { %v914_v9 = vpop.permute.xlu1 %913 }
 0x240   :  { %v918_v38 = vsel %vm323_vm4, %v912_v24, %v914_v9 }
 0x241   :  { %v926_v6 = vadd.f32 %v918_v38, %v858_v59 }
 0x242   :  { %v976_v55 = vpop.permute.xlu0 %975 }
 0x243   :  { %v1008_v23 = vpop.permute.xlu1 %1007 }
 0x244   :  { %v1015_v45 = vsel %vm360_vm5, %v1006_v2, %v1008_v23  ;;  %v1016_v34 = vsel %vm360_vm5, %v1008_v23, %v1010_v7 }
 0x245   :  { %v1023_v48 = vadd.f32 %v1015_v45, %v955_v17  ;;  %v1024_v12 = vadd.f32 %v1016_v34, %v956_v22 }
 0x246   :  { %v980_v27 = vpop.permute.xlu0 %979 }
 0x247   :  { %v1012_v31 = vpop.permute.xlu1 %1011  ;;  %v1027_v35 = vsub.f32 0.0, %v1023_v48  ;;  %v1028_v39 = vsub.f32 0.0, %v1024_v12 }
 0x248   :  { %v1017_v11 = vsel %vm360_vm5, %v1010_v7, %v1012_v31  ;;  %v1018_v54 = vsel %vm360_vm5, %v1012_v31, %v1014_v3 }
 0x249   :  { %v1025_v1 = vadd.f32 %v1017_v11, %v957_v56  ;;  %v1026_v53 = vadd.f32 %v1018_v54, %v958_v44  ;;  %v1516_v56 = vld [vmem:[#allocation7 + $0x20] sm:$0xff] }
 0x24a   :  { %v1037_v50 = vpop.permute.xlu0 %1036 }
 0x24b   :  { %v974_v33 = vpop.permute.xlu1 %973 }
 0x24c   :  { %v983_v60 = vsel %vm360_vm5, %v974_v33, %v976_v55 }
 0x24d   :  { %v991_v30 = vadd.f32 %v983_v60, %v923_v58  ;;  %v1517_v60 = vld [vmem:[#allocation7] sm:$0xff] }
 0x24e   :  { %v1041_v40 = vpop.permute.xlu0 %1040 }
 0x24f   :  { %v978_v29 = vpop.permute.xlu1 %977 }
 0x250   :  { %v984_v63 = vsel %vm360_vm5, %v976_v55, %v978_v29  ;;  %v985_v21 = vsel %vm360_vm5, %v978_v29, %v980_v27  ;;  %v1029_v55 = vsub.f32 0.0, %v1025_v1 }
 0x251   :  { %v992_v4 = vadd.f32 %v984_v63, %v924_v37  ;;  %v993_v46 = vadd.f32 %v985_v21, %v925_v36 }
 0x252   :  { %v1045_v0 = vpop.permute.xlu0 %1044 }
 0x253   :  { %v982_v5 = vpop.permute.xlu1 %981 }
 0x254   :  { %v986_v3 = vsel %vm360_vm5, %v980_v27, %v982_v5  ;;  %v1030_v5 = vsub.f32 0.0, %v1026_v53 }
 0x255   :  { %v994_v27 = vadd.f32 %v986_v3, %v926_v6  ;;  %v2809_v6 = vld [vmem:[#allocation8 + $0x8] sm:$0xff] }
 0x256   :  { %v1066_v19 = vpop.permute.xlu0 %1065 }
 0x257   :  { %v1039_v62 = vpop.permute.xlu1 %1038 }
 0x258   :  { %v1046_v49 = vsel %vm249_vm2, %v1037_v50, %v1039_v62  ;;  %v1047_v41 = vsel %vm249_vm2, %v1039_v62, %v1041_v40 }
 0x259   :  { %v1054_v15 = vmul.f32 %v1046_v49, %v1027_v35  ;;  %v1089_v52 = vmul.f32 %v1046_v49, %v991_v30  ;;  %v1055_v9 = vmul.f32 %v1047_v41, %v1028_v39  ;;  %v1090_v23 = vmul.f32 %v1047_v41, %v992_v4 }
 0x25a   :  { %v1070_v31 = vpop.permute.xlu0 %1069 }
 0x25b   :  { %v1043_v28 = vpop.permute.xlu1 %1042 }
 0x25c   :  { %v1048_v2 = vsel %vm249_vm2, %v1041_v40, %v1043_v28  ;;  %v1049_v50 = vsel %vm249_vm2, %v1043_v28, %v1045_v0 }
 0x25d   :  { %v1056_v18 = vmul.f32 %v1048_v2, %v1029_v55  ;;  %v1091_v13 = vmul.f32 %v1048_v2, %v993_v46  ;;  %v1057_v22 = vmul.f32 %v1049_v50, %v1030_v5  ;;  %v1092_v20 = vmul.f32 %v1049_v50, %v994_v27  ;;  %v1521_v2 = vld [vmem:[#allocation7 + $0x30] sm:$0xff] }
 0x25e   :  { %v1523_v50 = vld [vmem:[#allocation7 + $0x10] sm:$0xff] }
 0x25f   :  { %v1064_v26 = vpop.permute.xlu1 %1063 }
 0x260   :  { %v1073_v24 = vsel %vm249_vm2, %v1064_v26, %v1066_v19  ;;  %v1519_v26 = vld [vmem:[#allocation8] sm:$0xff] }
 0x261   :  { %v1081_v47 = vmul.f32 %v1073_v24, %v991_v30  ;;  %v1093_v7 = vmul.f32 %v1073_v24, %v1023_v48  ;;  %v1258_v48 = vpop.permute.xlu0 %1257  ;;  %v1520_v24 = vld [vmem:[#allocation7 + $0x28] sm:$0xff] }
 0x262   :  { %v1274_v37 = vmul.f32 %v1517_v60, %v1258_v48  ;;  %v1366_v41 = vmul.f32 %v1516_v56, %v1258_v48 }
 0x263   :  { %v1085_v33 = vsub.f32 %v1054_v15, %v1081_v47  ;;  %v1097_v29 = vsub.f32 %v1089_v52, %v1093_v7  ;;  %v1068_v16 = vpop.permute.xlu1 %1067 }
 0x264   :  { %v1074_v42 = vsel %vm249_vm2, %v1066_v19, %v1068_v16  ;;  %v1075_v40 = vsel %vm249_vm2, %v1068_v16, %v1070_v31 }
 0x265   :  { %v1082_v57 = vmul.f32 %v1074_v42, %v992_v4  ;;  %v1083_v51 = vmul.f32 %v1075_v40, %v993_v46  ;;  %v1094_v45 = vmul.f32 %v1074_v42, %v1024_v12  ;;  %v1095_v62 = vmul.f32 %v1075_v40, %v1025_v1  ;;  %1313 = vrot.lane.b32.xlu0 %v1085_v33, %s1676_s23 }
 0x267   :  { %v1086_v14 = vsub.f32 %v1055_v9, %v1082_v57  ;;  %v1087_v32 = vsub.f32 %v1056_v18, %v1083_v51  ;;  %v1098_v0 = vsub.f32 %v1090_v23, %v1094_v45  ;;  %v1099_v17 = vsub.f32 %v1091_v13, %v1095_v62  ;;  %v1072_v34 = vpop.permute.xlu1 %1071  ;;  %v1522_v23 = vld [vmem:[#allocation7 + $0x8] sm:$0xff]  ;;  %v1524_v57 = vld [vmem:[#allocation7 + $0x38] sm:$0xff] }
 0x268   :  { %v1076_v61 = vsel %vm249_vm2, %v1070_v31, %v1072_v34 }
 0x269   :  { %v1084_v43 = vmul.f32 %v1076_v61, %v994_v27  ;;  %v1096_v25 = vmul.f32 %v1076_v61, %v1026_v53  ;;  %1315 = vrot.lane.b32.xlu1 %v1086_v14, %s1676_s23  ;;  %1317 = vrot.lane.b32.xlu0 %v1087_v32, %s1676_s23  ;;  %v1525_v14 = vld [vmem:[#allocation7 + $0x18] sm:$0xff] }
 0x26b   :  { %v1088_v59 = vsub.f32 %v1057_v22, %v1084_v43  ;;  %v1100_v8 = vsub.f32 %v1092_v20, %v1096_v25  ;;  %v1260_v10 = vpop.permute.xlu1 %1259 }
 0x26c   :  { %v1262_v38 = vpop.permute.xlu0 %1261  ;;  %v1266_v4 = vsel %vm1265_vm1, %v1258_v48, %v1260_v10 }
 0x26d   :  { %1319 = vrot.lane.b32.xlu1 %v1088_v59, %s1676_s23  ;;  %1380 = vrot.lane.b32.xlu0 %v1097_v29, %s1676_s23  ;;  %v1267_v15 = vsel %vm1265_vm1, %v1260_v10, %v1262_v38  ;;  %v1275_v31 = vmul.f32 %v1522_v23, %v1266_v4  ;;  %v1367_v5 = vmul.f32 %v1520_v24, %v1266_v4 }
 0x26e   :  { %v1276_v33 = vmul.f32 %v1523_v50, %v1267_v15  ;;  %v1368_v48 = vmul.f32 %v1521_v2, %v1267_v15 }
 0x270   :  { %v1284_v11 = vpop.permute.xlu0 %1283 }
 0x271   :  { %1382 = vrot.lane.b32.xlu1 %v1098_v0, %s1676_s23  ;;  %1384 = vrot.lane.b32.xlu0 %v1099_v17, %s1676_s23  ;;  %v1299_v44 = vmul.f32 %v1516_v56, %v1284_v11  ;;  %v1361_v36 = vmul.f32 %v1517_v60, %v1284_v11 }
 0x272   :  { %v2805_v12 = vpop.permute.xlu1 %1263 }
 0x273   :  { %v1304_v54 = vsub.f32 %v1274_v37, %v1299_v44  ;;  %v1278_v53 = vmul.f32 %v1519_v26, %v2805_v12  ;;  %v1371_v46 = vadd.f32 %v1366_v41, %v1361_v36  ;;  %v1268_v18 = vsel %vm1265_vm1, %v1262_v38, %v2805_v12 }
 0x274   :  { %v1288_v58 = vpop.permute.xlu0 %1287  ;;  %v1277_v32 = vmul.f32 %v1525_v14, %v1268_v18  ;;  %v1369_v10 = vmul.f32 %v1524_v57, %v1268_v18  ;;  %v1370_v37 = vmul.f32 %v2809_v6, %v2805_v12 }
 0x275   :  { %1386 = vrot.lane.b32.xlu1 %v1100_v8, %s1676_s23 }
 0x276   :  { %v1286_v28 = vpop.permute.xlu1 %1285 }
 0x277   :  { %v1291_v35 = vsel %vm1265_vm1, %v1284_v11, %v1286_v28  ;;  %v1292_v30 = vsel %vm1265_vm1, %v1286_v28, %v1288_v58 }
 0x278   :  { %v1300_v52 = vmul.f32 %v1520_v24, %v1291_v35  ;;  %v1301_v47 = vmul.f32 %v1521_v2, %v1292_v30  ;;  %v1362_v13 = vmul.f32 %v1522_v23, %v1291_v35  ;;  %v1363_v34 = vmul.f32 %v1523_v50, %v1292_v30 }
 0x27a   :  { %v2807_v63 = vpop.permute.xlu1 %1289  ;;  %v1305_v45 = vsub.f32 %v1275_v31, %v1300_v52  ;;  %v1306_v62 = vsub.f32 %v1276_v33, %v1301_v47  ;;  %v1372_v25 = vadd.f32 %v1367_v5, %v1362_v13 }
 0x27b   :  { %v1303_v1 = vmul.f32 %v2809_v6, %v2807_v63  ;;  %v1293_v3 = vsel %vm1265_vm1, %v1288_v58, %v2807_v63  ;;  %v1365_v44 = vmul.f32 %v1519_v26, %v2807_v63  ;;  %v1373_v58 = vadd.f32 %v1368_v48, %v1363_v34 }
 0x27c   :  { %v1302_v51 = vmul.f32 %v1524_v57, %v1293_v3  ;;  %v1364_v20 = vmul.f32 %v1525_v14, %v1293_v3 }
 0x27d   :  { %v1308_v7 = vsub.f32 %v1278_v53, %v1303_v1 }
 0x27e   :  { %v1307_v43 = vsub.f32 %v1277_v32, %v1302_v51  ;;  %v1374_v60 = vadd.f32 %v1369_v10, %v1364_v20 }
 0x2d7   :  { %v1314_v19 = vpop.permute.xlu0 %1313 }
 0x2d8   :  { %v1329_v49 = vadd.f32 %v1314_v19, %v1304_v54 }
 0x2da   :  { %1339 = vrot.lane.b32.xlu0 %v1329_v49, %s1672_s19  ;;  %v1375_v49 = vadd.f32 %v1370_v37, %v1365_v44 }
 0x2db   :  { %v1316_v21 = vpop.permute.xlu1 %1315  ;;  %v1318_v39 = vpop.permute.xlu0 %1317 }
 0x2dc   :  { %v1321_v42 = vsel %vm1265_vm1, %v1314_v19, %v1316_v21  ;;  %v1322_v40 = vsel %vm1265_vm1, %v1316_v21, %v1318_v39 }
 0x2dd   :  { %v1330_v0 = vadd.f32 %v1321_v42, %v1305_v45  ;;  %v1331_v17 = vadd.f32 %v1322_v40, %v1306_v62 }
 0x2df   :  { %v1320_v9 = vpop.permute.xlu1 %1319  ;;  %v1381_v55 = vpop.permute.xlu0 %1380 }
 0x2e0   :  { %v1333_v29 = vadd.f32 %v1320_v9, %v1308_v7  ;;  %v1396_v16 = vadd.f32 %v1381_v55, %v1371_v46  ;;  %v1323_v22 = vsel %vm1265_vm1, %v1318_v39, %v1320_v9 }
 0x2e1   :  { %v1332_v38 = vadd.f32 %v1323_v22, %v1307_v43 }
 0x2e2   :  { %1347 = vrot.lane.b32.xlu0 %v1333_v29, %s1672_s19  ;;  %1406 = vrot.lane.b32.xlu1 %v1396_v16, %s1672_s19 }
 0x2e3   :  { %v1383_v27 = vpop.permute.xlu1 %1382  ;;  %v1385_v59 = vpop.permute.xlu0 %1384 }
 0x2e4   :  { %v1388_v61 = vsel %vm1265_vm1, %v1381_v55, %v1383_v27  ;;  %v1389_v28 = vsel %vm1265_vm1, %v1383_v27, %v1385_v59 }
 0x2e5   :  { %v1397_v11 = vadd.f32 %v1388_v61, %v1372_v25  ;;  %v1398_v54 = vadd.f32 %v1389_v28, %v1373_v58 }
 0x2e6   :  { %1343 = vrot.lane.b32.xlu0 %v1331_v17, %s1672_s19  ;;  %1341 = vrot.lane.b32.xlu1 %v1330_v0, %s1672_s19 }
 0x2e7   :  { %v1387_v8 = vpop.permute.xlu1 %1386 }
 0x2e8   :  { %v1390_v56 = vsel %vm1265_vm1, %v1385_v59, %v1387_v8  ;;  %v1400_v36 = vadd.f32 %v1387_v8, %v1375_v49 }
 0x2e9   :  { %v1399_v19 = vadd.f32 %v1390_v56, %v1374_v60 }
 0x2ea   :  { %1345 = vrot.lane.b32.xlu1 %v1332_v38, %s1672_s19  ;;  %1408 = vrot.lane.b32.xlu0 %v1397_v11, %s1672_s19 }
 0x2ee   :  { %1412 = vrot.lane.b32.xlu0 %v1399_v19, %s1672_s19  ;;  %1410 = vrot.lane.b32.xlu1 %v1398_v54, %s1672_s19 }
 0x2f2   :  { %1414 = vrot.lane.b32.xlu1 %v1400_v36, %s1672_s19 }
 0x34c   :  { %v1340_v63 = vpop.permute.xlu0 %1339 }
 0x354   :  { %v1407_v1 = vpop.permute.xlu1 %1406  ;;  %v1348_v35 = vpop.permute.xlu0 %1347 }
 0x358   :  { %v1342_v30 = vpop.permute.xlu1 %1341  ;;  %v1344_v21 = vpop.permute.xlu0 %1343 }
 0x359   :  { %v1349_v39 = vsel %vm249_vm2, %v1340_v63, %v1342_v30  ;;  %v1350_v41 = vsel %vm249_vm2, %v1342_v30, %v1344_v21 }
 0x35a   :  { %1357 = vst [vmem:[#allocation10] sm:$0xff] %v1349_v39  ;;  %1358 = vst [vmem:[#allocation10 + $0x8] sm:$0xff] %v1350_v41 }
 0x35c   :  { %v1346_v12 = vpop.permute.xlu1 %1345  ;;  %v1409_v6 = vpop.permute.xlu0 %1408 }
 0x35d   :  { %v1351_v26 = vsel %vm249_vm2, %v1344_v21, %v1346_v12  ;;  %v1352_v53 = vsel %vm249_vm2, %v1346_v12, %v1348_v35  ;;  %v1416_v4 = vsel %vm249_vm2, %v1407_v1, %v1409_v6 }
 0x35e   :  { %1359 = vst [vmem:[#allocation10 + $0x10] sm:$0xff] %v1351_v26  ;;  %1360 = vst [vmem:[#allocation10 + $0x18] sm:$0xff] %v1352_v53 }
 0x35f   :  { %1424 = vst [vmem:[#allocation10 + $0x20] sm:$0xff] %v1416_v4 }
 0x360   :  { %v1411_v15 = vpop.permute.xlu1 %1410  ;;  %v1413_v24 = vpop.permute.xlu0 %1412 }
 0x361   :  { %v1417_v52 = vsel %vm249_vm2, %v1409_v6, %v1411_v15  ;;  %v1418_v2 = vsel %vm249_vm2, %v1411_v15, %v1413_v24 }
 0x362   :  { %1425 = vst [vmem:[#allocation10 + $0x28] sm:$0xff] %v1417_v52  ;;  %1426 = vst [vmem:[#allocation10 + $0x30] sm:$0xff] %v1418_v2 }
 0x364   :  { %v1415_v47 = vpop.permute.xlu1 %1414 }
 0x365   :  { %v1419_v7 = vsel %vm249_vm2, %v1413_v24, %v1415_v47 }
 0x366   :  { %1427 = vst [vmem:[#allocation10 + $0x38] sm:$0xff] %v1419_v7 }
 0x367   :  { %1628 = shalt.err (!%p1625_p0)
}
 0x368   :  { %s1629_s29 = scalar_lea.hbm %s2868_s4, 1024 }
 0x369   :  { %p1630_p1 = scmp.ne.s32.totalorder %s2868_s4, %s1629_s29  ;;  %p1633_p2 = scmp.lt.u32.totalorder %s1629_s29, %s2868_s4 }
 0x36b   :  { %p1635_p3 = pnand %p1633_p2, %p1630_p1 }
 0x36d   :  { %1638 = shalt.err (!%p1635_p3)
}
 0x36e   :  { %1439 = dma.vmem_to_hbm [thread:$0]  %s1434_s0, 1024, %s2868_s4, [#allocation4], %s1651_s25, %s1651_s25, %s1652_s26  }
 0x36f   :  { %1645 = dma.done.wait [#allocation4], 1024  }
 0x370   :  { %1646 = vsyncadd [#allocation4], 4294966272 }
 0x371   :  { %1443 = vsyncpa [#allocation3], 1 }
 0x372   :  { %1444 = vsyncpa [#allocation6], 1 }
 0x373   :  { %1445 = vsyncpa [#allocation9], 1 }
 0x374   :  { %1446 = vsyncpa [#allocation4], 1 }

</bundles_post_ra>
